<compile_context>
chip_gen: v7x
topology: tpu7x:2x2x1
jax: 0.10.0
libtpu: 0.0.40
codegen_flags: <defaults>
</compile_context>

<pallas_src>
import jax
import jax.numpy as jnp
from jax import lax
from jax.experimental import pallas as pl
from jax.experimental.pallas import tpu as pltpu

DIGIT = 200000.0


def _make_kernel(D, H, L, TB, CT, stable_softmax):
    num_chunks = TB // CT

    def kernel(w1_ref, b1_ref, w2_ref, x_ref, o_ref):
        # w1_ref: (H*D,) SMEM   b1_ref: (H,) SMEM   w2_ref: (H,) SMEM
        # x_ref : (D, L, TB) VMEM                    o_ref : (L, TB) VMEM

        # Hoist all parameter scalars out of the chunk loop (SMEM -> sreg).
        w1v = [[w1_ref[j * D + d] for d in range(D)] for j in range(H)]
        b1v = [b1_ref[j] for j in range(H)]
        w2v = [w2_ref[j] for j in range(H)]

        def process(t0):
            # D dense (L, CT) tiles; L on sublanes, time steps on lanes.
            xs = [x_ref[d, :, pl.ds(t0, CT)] for d in range(D)]
            s = None
            for j in range(H):
                pre = xs[0] * w1v[j][0]
                for d in range(1, D):
                    pre = pre + xs[d] * w1v[j][d]
                pre = pre + b1v[j]
                term = jnp.tanh(pre) * w2v[j]        # fc2 fused (b2 cancels)
                s = term if s is None else s + term  # (L, CT) accumulator

            if stable_softmax:
                m = jnp.max(s, axis=0, keepdims=True)   # (1, CT) sublane reduce
                e = jnp.exp(s - m)
            else:
                # Safe opt-in: tanh in [-1,1] so |s| <= ||w2||_1 for Linear init.
                e = jnp.exp(s)
            denom = jnp.sum(e, axis=0, keepdims=True)   # (1, CT)
            # Lane-dense full-width store of the softmax slab.
            o_ref[:, pl.ds(t0, CT)] = e * pl.reciprocal(denom, approx=True)

        if num_chunks == 1:
            process(0)
        else:
            def body(c, carry):
                process(pl.multiple_of(c * CT, CT))
                return carry
            lax.fori_loop(0, num_chunks, body, 0, unroll=True)

    return kernel


def ncgm_forward(x, w1, b1, w2, b2=None, *, block_t=1024, chunk_t=256,
                 stable_softmax=True):
    """x: (T, L, D); w1: (H, D); b1: (H,); w2: (1, H); b2: (1,).

    Returns softmax(fc2(tanh(fc1(x))), dim=1).squeeze(), matching the module.
    b2 never enters the kernel: softmax over L is invariant to a constant shift.
    """
    T, L, D = x.shape
    H = w1.shape[0]

    x = x.astype(jnp.float32)
    w1_flat = jnp.reshape(w1, (H * D,)).astype(jnp.float32)   # SMEM scalars
    b1_flat = jnp.reshape(b1, (H,)).astype(jnp.float32)
    w2_flat = jnp.reshape(w2, (H,)).astype(jnp.float32)
    del b2  # exactly cancels in the softmax

    # --- Blocking: time steps ride the 128-lane axis. -----------------------
    chunk_t = max(128, (chunk_t // 128) * 128)
    block_t = max(chunk_t, (block_t // chunk_t) * chunk_t)
    if T <= chunk_t:
        TB = CT = T                       # single block == full array extent
        num_blocks = 1
    else:
        CT = chunk_t
        half = -(-T // 2)                 # aim for >=2 blocks (megacore / v7x)
        TB = min(block_t, -(-half // CT) * CT)
        num_blocks = -(-T // TB)
    T_pad = num_blocks * TB

    # Lane-dense layout (D, L, T_pad); zero-padded time steps give finite
    # (uniform) softmax rows that are sliced off below.
    x_t = jnp.transpose(x, (2, 1, 0))
    if T_pad != T:
        x_t = jnp.pad(x_t, ((0, 0), (0, 0), (0, T_pad - T)))

    kernel = _make_kernel(D, H, L, TB, CT, stable_softmax)

    out = pl.pallas_call(
        kernel,
        out_shape=jax.ShapeDtypeStruct((L, T_pad), jnp.float32),
        grid_spec=pltpu.PrefetchScalarGridSpec(
            num_scalar_prefetch=0,
            grid=(num_blocks,),
            in_specs=[
                pl.BlockSpec(memory_space=pltpu.MemorySpace.SMEM),   # w1 flat
                pl.BlockSpec(memory_space=pltpu.MemorySpace.SMEM),   # b1
                pl.BlockSpec(memory_space=pltpu.MemorySpace.SMEM),   # w2 flat
                pl.BlockSpec((D, L, TB), lambda i: (0, 0, i)),       # x
            ],
            out_specs=pl.BlockSpec((L, TB), lambda i: (0, i)),
        ),
        compiler_params=pltpu.CompilerParams(
            dimension_semantics=("parallel",),
        ),
    )(w1_flat, b1_flat, w2_flat, x_t)

    theta = jnp.transpose(out[:, :T])     # (T, L); tiny wrapper-side transpose
    # PyTorch `.squeeze()` drops all size-1 dims (e.g. (L,) when T == 1).
    return jnp.squeeze(theta)


def _ncgm_reference(x, w1, b1, w2, b2):
    h = jnp.tanh(jnp.einsum("tld,hd->tlh", x, w1) + b1)
    s = jnp.einsum("tlh,oh->tlo", h, w2) + b2
    return jnp.squeeze(jax.nn.softmax(s, axis=1))


if __name__ == "__main__":
    # Small shapes consistent with the module: T=2 time steps, L=16 locations,
    # input_size=4, hidden_size=32.
    T, L, D, H = 2, 16, 4, 32

    key = jax.random.PRNGKey(0)
    kx, kz, kw1, kb1, kw2, kb2, kx2 = jax.random.split(key, 7)

    x = jax.random.normal(kx, (T, L, D), dtype=jnp.float32)

    # Parameters (deterministic synthetic init; PyTorch-Linear-style uniform).
    z = jax.random.uniform(kz, (T, L, L), dtype=jnp.float32) * 100.0
    Z = z / DIGIT  # nn.Parameter(z / digit): unused in forward, kept for parity.

    lim1 = 1.0 / jnp.sqrt(D)
    w1 = jax.random.uniform(kw1, (H, D), jnp.float32, -lim1, lim1)
    b1 = jax.random.uniform(kb1, (H,), jnp.float32, -lim1, lim1)
    lim2 = 1.0 / jnp.sqrt(H)
    w2 = jax.random.uniform(kw2, (1, H), jnp.float32, -lim2, lim2)
    b2 = jax.random.uniform(kb2, (1,), jnp.float32, -lim2, lim2)

    # --- Small case (single block / single chunk path). ---------------------
    theta = jax.block_until_ready(ncgm_forward(x, w1, b1, w2, b2))
    ref = _ncgm_reference(x, w1, b1, w2, b2)
    assert theta.shape == (T, L)
    # Tolerance accounts for the EUP approximate reciprocal in the softmax.
    assert jnp.allclose(theta, ref, atol=5e-4, rtol=5e-4)

    # --- Larger T exercising padding, multi-block grid and chunk loop. ------
    T2 = 777
    x2 = jax.random.normal(kx2, (T2, L, D), dtype=jnp.float32)
    theta2 = jax.block_until_ready(ncgm_forward(x2, w1, b1, w2, b2))
    ref2 = _ncgm_reference(x2, w1, b1, w2, b2)
    assert theta2.shape == (T2, L)
    assert jnp.allclose(theta2, ref2, atol=5e-4, rtol=5e-4)

    print("KERNEL_OK")
</pallas_src>

<mosaic_0001>
module attributes {stable_mosaic.version = 11 : i64} {
  func.func @kernel(%arg0: i32, %arg1: memref<128xf32, #tpu.memory_space<smem>>, %arg2: memref<32xf32, #tpu.memory_space<smem>>, %arg3: memref<32xf32, #tpu.memory_space<smem>>, %arg4: memref<4x16x2xf32, #tpu.memory_space<vmem>>, %arg5: memref<16x2xf32, #tpu.memory_space<vmem>>) attributes {dimension_semantics = [#tpu.dimension_semantics<parallel>], iteration_bounds = array<i64: 1>, scalar_prefetch = 0 : i64, scratch_operands = 0 : i64, tpu.core_type = #tpu.core_type<tc>, window_params = [{transform_indices = @transform_0, window_bounds = array<i64: 128>}, {transform_indices = @transform_1, window_bounds = array<i64: 32>}, {transform_indices = @transform_2, window_bounds = array<i64: 32>}, {transform_indices = @transform_3, window_bounds = array<i64: 4, 16, 2>}, {transform_indices = @transform_4, window_bounds = array<i64: 16, 2>}]} {
    %c0 = arith.constant 0 : index
    %0 = memref.load %arg1[%c0] : memref<128xf32, #tpu.memory_space<smem>>
    %c1 = arith.constant 1 : index
    %1 = memref.load %arg1[%c1] : memref<128xf32, #tpu.memory_space<smem>>
    %c2 = arith.constant 2 : index
    %2 = memref.load %arg1[%c2] : memref<128xf32, #tpu.memory_space<smem>>
    %c3 = arith.constant 3 : index
    %3 = memref.load %arg1[%c3] : memref<128xf32, #tpu.memory_space<smem>>
    %c4 = arith.constant 4 : index
    %4 = memref.load %arg1[%c4] : memref<128xf32, #tpu.memory_space<smem>>
    %c5 = arith.constant 5 : index
    %5 = memref.load %arg1[%c5] : memref<128xf32, #tpu.memory_space<smem>>
    %c6 = arith.constant 6 : index
    %6 = memref.load %arg1[%c6] : memref<128xf32, #tpu.memory_space<smem>>
    %c7 = arith.constant 7 : index
    %7 = memref.load %arg1[%c7] : memref<128xf32, #tpu.memory_space<smem>>
    %c8 = arith.constant 8 : index
    %8 = memref.load %arg1[%c8] : memref<128xf32, #tpu.memory_space<smem>>
    %c9 = arith.constant 9 : index
    %9 = memref.load %arg1[%c9] : memref<128xf32, #tpu.memory_space<smem>>
    %c10 = arith.constant 10 : index
    %10 = memref.load %arg1[%c10] : memref<128xf32, #tpu.memory_space<smem>>
    %c11 = arith.constant 11 : index
    %11 = memref.load %arg1[%c11] : memref<128xf32, #tpu.memory_space<smem>>
    %c12 = arith.constant 12 : index
    %12 = memref.load %arg1[%c12] : memref<128xf32, #tpu.memory_space<smem>>
    %c13 = arith.constant 13 : index
    %13 = memref.load %arg1[%c13] : memref<128xf32, #tpu.memory_space<smem>>
    %c14 = arith.constant 14 : index
    %14 = memref.load %arg1[%c14] : memref<128xf32, #tpu.memory_space<smem>>
    %c15 = arith.constant 15 : index
    %15 = memref.load %arg1[%c15] : memref<128xf32, #tpu.memory_space<smem>>
    %c16 = arith.constant 16 : index
    %16 = memref.load %arg1[%c16] : memref<128xf32, #tpu.memory_space<smem>>
    %c17 = arith.constant 17 : index
    %17 = memref.load %arg1[%c17] : memref<128xf32, #tpu.memory_space<smem>>
    %c18 = arith.constant 18 : index
    %18 = memref.load %arg1[%c18] : memref<128xf32, #tpu.memory_space<smem>>
    %c19 = arith.constant 19 : index
    %19 = memref.load %arg1[%c19] : memref<128xf32, #tpu.memory_space<smem>>
    %c20 = arith.constant 20 : index
    %20 = memref.load %arg1[%c20] : memref<128xf32, #tpu.memory_space<smem>>
    %c21 = arith.constant 21 : index
    %21 = memref.load %arg1[%c21] : memref<128xf32, #tpu.memory_space<smem>>
    %c22 = arith.constant 22 : index
    %22 = memref.load %arg1[%c22] : memref<128xf32, #tpu.memory_space<smem>>
    %c23 = arith.constant 23 : index
    %23 = memref.load %arg1[%c23] : memref<128xf32, #tpu.memory_space<smem>>
    %c24 = arith.constant 24 : index
    %24 = memref.load %arg1[%c24] : memref<128xf32, #tpu.memory_space<smem>>
    %c25 = arith.constant 25 : index
    %25 = memref.load %arg1[%c25] : memref<128xf32, #tpu.memory_space<smem>>
    %c26 = arith.constant 26 : index
    %26 = memref.load %arg1[%c26] : memref<128xf32, #tpu.memory_space<smem>>
    %c27 = arith.constant 27 : index
    %27 = memref.load %arg1[%c27] : memref<128xf32, #tpu.memory_space<smem>>
    %c28 = arith.constant 28 : index
    %28 = memref.load %arg1[%c28] : memref<128xf32, #tpu.memory_space<smem>>
    %c29 = arith.constant 29 : index
    %29 = memref.load %arg1[%c29] : memref<128xf32, #tpu.memory_space<smem>>
    %c30 = arith.constant 30 : index
    %30 = memref.load %arg1[%c30] : memref<128xf32, #tpu.memory_space<smem>>
    %c31 = arith.constant 31 : index
    %31 = memref.load %arg1[%c31] : memref<128xf32, #tpu.memory_space<smem>>
    %c32 = arith.constant 32 : index
    %32 = memref.load %arg1[%c32] : memref<128xf32, #tpu.memory_space<smem>>
    %c33 = arith.constant 33 : index
    %33 = memref.load %arg1[%c33] : memref<128xf32, #tpu.memory_space<smem>>
    %c34 = arith.constant 34 : index
    %34 = memref.load %arg1[%c34] : memref<128xf32, #tpu.memory_space<smem>>
    %c35 = arith.constant 35 : index
    %35 = memref.load %arg1[%c35] : memref<128xf32, #tpu.memory_space<smem>>
    %c36 = arith.constant 36 : index
    %36 = memref.load %arg1[%c36] : memref<128xf32, #tpu.memory_space<smem>>
    %c37 = arith.constant 37 : index
    %37 = memref.load %arg1[%c37] : memref<128xf32, #tpu.memory_space<smem>>
    %c38 = arith.constant 38 : index
    %38 = memref.load %arg1[%c38] : memref<128xf32, #tpu.memory_space<smem>>
    %c39 = arith.constant 39 : index
    %39 = memref.load %arg1[%c39] : memref<128xf32, #tpu.memory_space<smem>>
    %c40 = arith.constant 40 : index
    %40 = memref.load %arg1[%c40] : memref<128xf32, #tpu.memory_space<smem>>
    %c41 = arith.constant 41 : index
    %41 = memref.load %arg1[%c41] : memref<128xf32, #tpu.memory_space<smem>>
    %c42 = arith.constant 42 : index
    %42 = memref.load %arg1[%c42] : memref<128xf32, #tpu.memory_space<smem>>
    %c43 = arith.constant 43 : index
    %43 = memref.load %arg1[%c43] : memref<128xf32, #tpu.memory_space<smem>>
    %c44 = arith.constant 44 : index
    %44 = memref.load %arg1[%c44] : memref<128xf32, #tpu.memory_space<smem>>
    %c45 = arith.constant 45 : index
    %45 = memref.load %arg1[%c45] : memref<128xf32, #tpu.memory_space<smem>>
    %c46 = arith.constant 46 : index
    %46 = memref.load %arg1[%c46] : memref<128xf32, #tpu.memory_space<smem>>
    %c47 = arith.constant 47 : index
    %47 = memref.load %arg1[%c47] : memref<128xf32, #tpu.memory_space<smem>>
    %c48 = arith.constant 48 : index
    %48 = memref.load %arg1[%c48] : memref<128xf32, #tpu.memory_space<smem>>
    %c49 = arith.constant 49 : index
    %49 = memref.load %arg1[%c49] : memref<128xf32, #tpu.memory_space<smem>>
    %c50 = arith.constant 50 : index
    %50 = memref.load %arg1[%c50] : memref<128xf32, #tpu.memory_space<smem>>
    %c51 = arith.constant 51 : index
    %51 = memref.load %arg1[%c51] : memref<128xf32, #tpu.memory_space<smem>>
    %c52 = arith.constant 52 : index
    %52 = memref.load %arg1[%c52] : memref<128xf32, #tpu.memory_space<smem>>
    %c53 = arith.constant 53 : index
    %53 = memref.load %arg1[%c53] : memref<128xf32, #tpu.memory_space<smem>>
    %c54 = arith.constant 54 : index
    %54 = memref.load %arg1[%c54] : memref<128xf32, #tpu.memory_space<smem>>
    %c55 = arith.constant 55 : index
    %55 = memref.load %arg1[%c55] : memref<128xf32, #tpu.memory_space<smem>>
    %c56 = arith.constant 56 : index
    %56 = memref.load %arg1[%c56] : memref<128xf32, #tpu.memory_space<smem>>
    %c57 = arith.constant 57 : index
    %57 = memref.load %arg1[%c57] : memref<128xf32, #tpu.memory_space<smem>>
    %c58 = arith.constant 58 : index
    %58 = memref.load %arg1[%c58] : memref<128xf32, #tpu.memory_space<smem>>
    %c59 = arith.constant 59 : index
    %59 = memref.load %arg1[%c59] : memref<128xf32, #tpu.memory_space<smem>>
    %c60 = arith.constant 60 : index
    %60 = memref.load %arg1[%c60] : memref<128xf32, #tpu.memory_space<smem>>
    %c61 = arith.constant 61 : index
    %61 = memref.load %arg1[%c61] : memref<128xf32, #tpu.memory_space<smem>>
    %c62 = arith.constant 62 : index
    %62 = memref.load %arg1[%c62] : memref<128xf32, #tpu.memory_space<smem>>
    %c63 = arith.constant 63 : index
    %63 = memref.load %arg1[%c63] : memref<128xf32, #tpu.memory_space<smem>>
    %c64 = arith.constant 64 : index
    %64 = memref.load %arg1[%c64] : memref<128xf32, #tpu.memory_space<smem>>
    %c65 = arith.constant 65 : index
    %65 = memref.load %arg1[%c65] : memref<128xf32, #tpu.memory_space<smem>>
    %c66 = arith.constant 66 : index
    %66 = memref.load %arg1[%c66] : memref<128xf32, #tpu.memory_space<smem>>
    %c67 = arith.constant 67 : index
    %67 = memref.load %arg1[%c67] : memref<128xf32, #tpu.memory_space<smem>>
    %c68 = arith.constant 68 : index
    %68 = memref.load %arg1[%c68] : memref<128xf32, #tpu.memory_space<smem>>
    %c69 = arith.constant 69 : index
    %69 = memref.load %arg1[%c69] : memref<128xf32, #tpu.memory_space<smem>>
    %c70 = arith.constant 70 : index
    %70 = memref.load %arg1[%c70] : memref<128xf32, #tpu.memory_space<smem>>
    %c71 = arith.constant 71 : index
    %71 = memref.load %arg1[%c71] : memref<128xf32, #tpu.memory_space<smem>>
    %c72 = arith.constant 72 : index
    %72 = memref.load %arg1[%c72] : memref<128xf32, #tpu.memory_space<smem>>
    %c73 = arith.constant 73 : index
    %73 = memref.load %arg1[%c73] : memref<128xf32, #tpu.memory_space<smem>>
    %c74 = arith.constant 74 : index
    %74 = memref.load %arg1[%c74] : memref<128xf32, #tpu.memory_space<smem>>
    %c75 = arith.constant 75 : index
    %75 = memref.load %arg1[%c75] : memref<128xf32, #tpu.memory_space<smem>>
    %c76 = arith.constant 76 : index
    %76 = memref.load %arg1[%c76] : memref<128xf32, #tpu.memory_space<smem>>
    %c77 = arith.constant 77 : index
    %77 = memref.load %arg1[%c77] : memref<128xf32, #tpu.memory_space<smem>>
    %c78 = arith.constant 78 : index
    %78 = memref.load %arg1[%c78] : memref<128xf32, #tpu.memory_space<smem>>
    %c79 = arith.constant 79 : index
    %79 = memref.load %arg1[%c79] : memref<128xf32, #tpu.memory_space<smem>>
    %c80 = arith.constant 80 : index
    %80 = memref.load %arg1[%c80] : memref<128xf32, #tpu.memory_space<smem>>
    %c81 = arith.constant 81 : index
    %81 = memref.load %arg1[%c81] : memref<128xf32, #tpu.memory_space<smem>>
    %c82 = arith.constant 82 : index
    %82 = memref.load %arg1[%c82] : memref<128xf32, #tpu.memory_space<smem>>
    %c83 = arith.constant 83 : index
    %83 = memref.load %arg1[%c83] : memref<128xf32, #tpu.memory_space<smem>>
    %c84 = arith.constant 84 : index
    %84 = memref.load %arg1[%c84] : memref<128xf32, #tpu.memory_space<smem>>
    %c85 = arith.constant 85 : index
    %85 = memref.load %arg1[%c85] : memref<128xf32, #tpu.memory_space<smem>>
    %c86 = arith.constant 86 : index
    %86 = memref.load %arg1[%c86] : memref<128xf32, #tpu.memory_space<smem>>
    %c87 = arith.constant 87 : index
    %87 = memref.load %arg1[%c87] : memref<128xf32, #tpu.memory_space<smem>>
    %c88 = arith.constant 88 : index
    %88 = memref.load %arg1[%c88] : memref<128xf32, #tpu.memory_space<smem>>
    %c89 = arith.constant 89 : index
    %89 = memref.load %arg1[%c89] : memref<128xf32, #tpu.memory_space<smem>>
    %c90 = arith.constant 90 : index
    %90 = memref.load %arg1[%c90] : memref<128xf32, #tpu.memory_space<smem>>
    %c91 = arith.constant 91 : index
    %91 = memref.load %arg1[%c91] : memref<128xf32, #tpu.memory_space<smem>>
    %c92 = arith.constant 92 : index
    %92 = memref.load %arg1[%c92] : memref<128xf32, #tpu.memory_space<smem>>
    %c93 = arith.constant 93 : index
    %93 = memref.load %arg1[%c93] : memref<128xf32, #tpu.memory_space<smem>>
    %c94 = arith.constant 94 : index
    %94 = memref.load %arg1[%c94] : memref<128xf32, #tpu.memory_space<smem>>
    %c95 = arith.constant 95 : index
    %95 = memref.load %arg1[%c95] : memref<128xf32, #tpu.memory_space<smem>>
    %c96 = arith.constant 96 : index
    %96 = memref.load %arg1[%c96] : memref<128xf32, #tpu.memory_space<smem>>
    %c97 = arith.constant 97 : index
    %97 = memref.load %arg1[%c97] : memref<128xf32, #tpu.memory_space<smem>>
    %c98 = arith.constant 98 : index
    %98 = memref.load %arg1[%c98] : memref<128xf32, #tpu.memory_space<smem>>
    %c99 = arith.constant 99 : index
    %99 = memref.load %arg1[%c99] : memref<128xf32, #tpu.memory_space<smem>>
    %c100 = arith.constant 100 : index
    %100 = memref.load %arg1[%c100] : memref<128xf32, #tpu.memory_space<smem>>
    %c101 = arith.constant 101 : index
    %101 = memref.load %arg1[%c101] : memref<128xf32, #tpu.memory_space<smem>>
    %c102 = arith.constant 102 : index
    %102 = memref.load %arg1[%c102] : memref<128xf32, #tpu.memory_space<smem>>
    %c103 = arith.constant 103 : index
    %103 = memref.load %arg1[%c103] : memref<128xf32, #tpu.memory_space<smem>>
    %c104 = arith.constant 104 : index
    %104 = memref.load %arg1[%c104] : memref<128xf32, #tpu.memory_space<smem>>
    %c105 = arith.constant 105 : index
    %105 = memref.load %arg1[%c105] : memref<128xf32, #tpu.memory_space<smem>>
    %c106 = arith.constant 106 : index
    %106 = memref.load %arg1[%c106] : memref<128xf32, #tpu.memory_space<smem>>
    %c107 = arith.constant 107 : index
    %107 = memref.load %arg1[%c107] : memref<128xf32, #tpu.memory_space<smem>>
    %c108 = arith.constant 108 : index
    %108 = memref.load %arg1[%c108] : memref<128xf32, #tpu.memory_space<smem>>
    %c109 = arith.constant 109 : index
    %109 = memref.load %arg1[%c109] : memref<128xf32, #tpu.memory_space<smem>>
    %c110 = arith.constant 110 : index
    %110 = memref.load %arg1[%c110] : memref<128xf32, #tpu.memory_space<smem>>
    %c111 = arith.constant 111 : index
    %111 = memref.load %arg1[%c111] : memref<128xf32, #tpu.memory_space<smem>>
    %c112 = arith.constant 112 : index
    %112 = memref.load %arg1[%c112] : memref<128xf32, #tpu.memory_space<smem>>
    %c113 = arith.constant 113 : index
    %113 = memref.load %arg1[%c113] : memref<128xf32, #tpu.memory_space<smem>>
    %c114 = arith.constant 114 : index
    %114 = memref.load %arg1[%c114] : memref<128xf32, #tpu.memory_space<smem>>
    %c115 = arith.constant 115 : index
    %115 = memref.load %arg1[%c115] : memref<128xf32, #tpu.memory_space<smem>>
    %c116 = arith.constant 116 : index
    %116 = memref.load %arg1[%c116] : memref<128xf32, #tpu.memory_space<smem>>
    %c117 = arith.constant 117 : index
    %117 = memref.load %arg1[%c117] : memref<128xf32, #tpu.memory_space<smem>>
    %c118 = arith.constant 118 : index
    %118 = memref.load %arg1[%c118] : memref<128xf32, #tpu.memory_space<smem>>
    %c119 = arith.constant 119 : index
    %119 = memref.load %arg1[%c119] : memref<128xf32, #tpu.memory_space<smem>>
    %c120 = arith.constant 120 : index
    %120 = memref.load %arg1[%c120] : memref<128xf32, #tpu.memory_space<smem>>
    %c121 = arith.constant 121 : index
    %121 = memref.load %arg1[%c121] : memref<128xf32, #tpu.memory_space<smem>>
    %c122 = arith.constant 122 : index
    %122 = memref.load %arg1[%c122] : memref<128xf32, #tpu.memory_space<smem>>
    %c123 = arith.constant 123 : index
    %123 = memref.load %arg1[%c123] : memref<128xf32, #tpu.memory_space<smem>>
    %c124 = arith.constant 124 : index
    %124 = memref.load %arg1[%c124] : memref<128xf32, #tpu.memory_space<smem>>
    %c125 = arith.constant 125 : index
    %125 = memref.load %arg1[%c125] : memref<128xf32, #tpu.memory_space<smem>>
    %c126 = arith.constant 126 : index
    %126 = memref.load %arg1[%c126] : memref<128xf32, #tpu.memory_space<smem>>
    %c127 = arith.constant 127 : index
    %127 = memref.load %arg1[%c127] : memref<128xf32, #tpu.memory_space<smem>>
    %c0_0 = arith.constant 0 : index
    %128 = memref.load %arg2[%c0_0] : memref<32xf32, #tpu.memory_space<smem>>
    %c1_1 = arith.constant 1 : index
    %129 = memref.load %arg2[%c1_1] : memref<32xf32, #tpu.memory_space<smem>>
    %c2_2 = arith.constant 2 : index
    %130 = memref.load %arg2[%c2_2] : memref<32xf32, #tpu.memory_space<smem>>
    %c3_3 = arith.constant 3 : index
    %131 = memref.load %arg2[%c3_3] : memref<32xf32, #tpu.memory_space<smem>>
    %c4_4 = arith.constant 4 : index
    %132 = memref.load %arg2[%c4_4] : memref<32xf32, #tpu.memory_space<smem>>
    %c5_5 = arith.constant 5 : index
    %133 = memref.load %arg2[%c5_5] : memref<32xf32, #tpu.memory_space<smem>>
    %c6_6 = arith.constant 6 : index
    %134 = memref.load %arg2[%c6_6] : memref<32xf32, #tpu.memory_space<smem>>
    %c7_7 = arith.constant 7 : index
    %135 = memref.load %arg2[%c7_7] : memref<32xf32, #tpu.memory_space<smem>>
    %c8_8 = arith.constant 8 : index
    %136 = memref.load %arg2[%c8_8] : memref<32xf32, #tpu.memory_space<smem>>
    %c9_9 = arith.constant 9 : index
    %137 = memref.load %arg2[%c9_9] : memref<32xf32, #tpu.memory_space<smem>>
    %c10_10 = arith.constant 10 : index
    %138 = memref.load %arg2[%c10_10] : memref<32xf32, #tpu.memory_space<smem>>
    %c11_11 = arith.constant 11 : index
    %139 = memref.load %arg2[%c11_11] : memref<32xf32, #tpu.memory_space<smem>>
    %c12_12 = arith.constant 12 : index
    %140 = memref.load %arg2[%c12_12] : memref<32xf32, #tpu.memory_space<smem>>
    %c13_13 = arith.constant 13 : index
    %141 = memref.load %arg2[%c13_13] : memref<32xf32, #tpu.memory_space<smem>>
    %c14_14 = arith.constant 14 : index
    %142 = memref.load %arg2[%c14_14] : memref<32xf32, #tpu.memory_space<smem>>
    %c15_15 = arith.constant 15 : index
    %143 = memref.load %arg2[%c15_15] : memref<32xf32, #tpu.memory_space<smem>>
    %c16_16 = arith.constant 16 : index
    %144 = memref.load %arg2[%c16_16] : memref<32xf32, #tpu.memory_space<smem>>
    %c17_17 = arith.constant 17 : index
    %145 = memref.load %arg2[%c17_17] : memref<32xf32, #tpu.memory_space<smem>>
    %c18_18 = arith.constant 18 : index
    %146 = memref.load %arg2[%c18_18] : memref<32xf32, #tpu.memory_space<smem>>
    %c19_19 = arith.constant 19 : index
    %147 = memref.load %arg2[%c19_19] : memref<32xf32, #tpu.memory_space<smem>>
    %c20_20 = arith.constant 20 : index
    %148 = memref.load %arg2[%c20_20] : memref<32xf32, #tpu.memory_space<smem>>
    %c21_21 = arith.constant 21 : index
    %149 = memref.load %arg2[%c21_21] : memref<32xf32, #tpu.memory_space<smem>>
    %c22_22 = arith.constant 22 : index
    %150 = memref.load %arg2[%c22_22] : memref<32xf32, #tpu.memory_space<smem>>
    %c23_23 = arith.constant 23 : index
    %151 = memref.load %arg2[%c23_23] : memref<32xf32, #tpu.memory_space<smem>>
    %c24_24 = arith.constant 24 : index
    %152 = memref.load %arg2[%c24_24] : memref<32xf32, #tpu.memory_space<smem>>
    %c25_25 = arith.constant 25 : index
    %153 = memref.load %arg2[%c25_25] : memref<32xf32, #tpu.memory_space<smem>>
    %c26_26 = arith.constant 26 : index
    %154 = memref.load %arg2[%c26_26] : memref<32xf32, #tpu.memory_space<smem>>
    %c27_27 = arith.constant 27 : index
    %155 = memref.load %arg2[%c27_27] : memref<32xf32, #tpu.memory_space<smem>>
    %c28_28 = arith.constant 28 : index
    %156 = memref.load %arg2[%c28_28] : memref<32xf32, #tpu.memory_space<smem>>
    %c29_29 = arith.constant 29 : index
    %157 = memref.load %arg2[%c29_29] : memref<32xf32, #tpu.memory_space<smem>>
    %c30_30 = arith.constant 30 : index
    %158 = memref.load %arg2[%c30_30] : memref<32xf32, #tpu.memory_space<smem>>
    %c31_31 = arith.constant 31 : index
    %159 = memref.load %arg2[%c31_31] : memref<32xf32, #tpu.memory_space<smem>>
    %c0_32 = arith.constant 0 : index
    %160 = memref.load %arg3[%c0_32] : memref<32xf32, #tpu.memory_space<smem>>
    %c1_33 = arith.constant 1 : index
    %161 = memref.load %arg3[%c1_33] : memref<32xf32, #tpu.memory_space<smem>>
    %c2_34 = arith.constant 2 : index
    %162 = memref.load %arg3[%c2_34] : memref<32xf32, #tpu.memory_space<smem>>
    %c3_35 = arith.constant 3 : index
    %163 = memref.load %arg3[%c3_35] : memref<32xf32, #tpu.memory_space<smem>>
    %c4_36 = arith.constant 4 : index
    %164 = memref.load %arg3[%c4_36] : memref<32xf32, #tpu.memory_space<smem>>
    %c5_37 = arith.constant 5 : index
    %165 = memref.load %arg3[%c5_37] : memref<32xf32, #tpu.memory_space<smem>>
    %c6_38 = arith.constant 6 : index
    %166 = memref.load %arg3[%c6_38] : memref<32xf32, #tpu.memory_space<smem>>
    %c7_39 = arith.constant 7 : index
    %167 = memref.load %arg3[%c7_39] : memref<32xf32, #tpu.memory_space<smem>>
    %c8_40 = arith.constant 8 : index
    %168 = memref.load %arg3[%c8_40] : memref<32xf32, #tpu.memory_space<smem>>
    %c9_41 = arith.constant 9 : index
    %169 = memref.load %arg3[%c9_41] : memref<32xf32, #tpu.memory_space<smem>>
    %c10_42 = arith.constant 10 : index
    %170 = memref.load %arg3[%c10_42] : memref<32xf32, #tpu.memory_space<smem>>
    %c11_43 = arith.constant 11 : index
    %171 = memref.load %arg3[%c11_43] : memref<32xf32, #tpu.memory_space<smem>>
    %c12_44 = arith.constant 12 : index
    %172 = memref.load %arg3[%c12_44] : memref<32xf32, #tpu.memory_space<smem>>
    %c13_45 = arith.constant 13 : index
    %173 = memref.load %arg3[%c13_45] : memref<32xf32, #tpu.memory_space<smem>>
    %c14_46 = arith.constant 14 : index
    %174 = memref.load %arg3[%c14_46] : memref<32xf32, #tpu.memory_space<smem>>
    %c15_47 = arith.constant 15 : index
    %175 = memref.load %arg3[%c15_47] : memref<32xf32, #tpu.memory_space<smem>>
    %c16_48 = arith.constant 16 : index
    %176 = memref.load %arg3[%c16_48] : memref<32xf32, #tpu.memory_space<smem>>
    %c17_49 = arith.constant 17 : index
    %177 = memref.load %arg3[%c17_49] : memref<32xf32, #tpu.memory_space<smem>>
    %c18_50 = arith.constant 18 : index
    %178 = memref.load %arg3[%c18_50] : memref<32xf32, #tpu.memory_space<smem>>
    %c19_51 = arith.constant 19 : index
    %179 = memref.load %arg3[%c19_51] : memref<32xf32, #tpu.memory_space<smem>>
    %c20_52 = arith.constant 20 : index
    %180 = memref.load %arg3[%c20_52] : memref<32xf32, #tpu.memory_space<smem>>
    %c21_53 = arith.constant 21 : index
    %181 = memref.load %arg3[%c21_53] : memref<32xf32, #tpu.memory_space<smem>>
    %c22_54 = arith.constant 22 : index
    %182 = memref.load %arg3[%c22_54] : memref<32xf32, #tpu.memory_space<smem>>
    %c23_55 = arith.constant 23 : index
    %183 = memref.load %arg3[%c23_55] : memref<32xf32, #tpu.memory_space<smem>>
    %c24_56 = arith.constant 24 : index
    %184 = memref.load %arg3[%c24_56] : memref<32xf32, #tpu.memory_space<smem>>
    %c25_57 = arith.constant 25 : index
    %185 = memref.load %arg3[%c25_57] : memref<32xf32, #tpu.memory_space<smem>>
    %c26_58 = arith.constant 26 : index
    %186 = memref.load %arg3[%c26_58] : memref<32xf32, #tpu.memory_space<smem>>
    %c27_59 = arith.constant 27 : index
    %187 = memref.load %arg3[%c27_59] : memref<32xf32, #tpu.memory_space<smem>>
    %c28_60 = arith.constant 28 : index
    %188 = memref.load %arg3[%c28_60] : memref<32xf32, #tpu.memory_space<smem>>
    %c29_61 = arith.constant 29 : index
    %189 = memref.load %arg3[%c29_61] : memref<32xf32, #tpu.memory_space<smem>>
    %c30_62 = arith.constant 30 : index
    %190 = memref.load %arg3[%c30_62] : memref<32xf32, #tpu.memory_space<smem>>
    %c31_63 = arith.constant 31 : index
    %191 = memref.load %arg3[%c31_63] : memref<32xf32, #tpu.memory_space<smem>>
    %c0_64 = arith.constant 0 : index
    %c0_65 = arith.constant 0 : index
    %c0_66 = arith.constant 0 : index
    %192 = vector.load %arg4[%c0_64, %c0_65, %c0_66] : memref<4x16x2xf32, #tpu.memory_space<vmem>>, vector<1x16x2xf32>
    %193 = vector.shape_cast %192 : vector<1x16x2xf32> to vector<16x2xf32>
    %c1_67 = arith.constant 1 : index
    %c0_68 = arith.constant 0 : index
    %c0_69 = arith.constant 0 : index
    %194 = vector.load %arg4[%c1_67, %c0_68, %c0_69] : memref<4x16x2xf32, #tpu.memory_space<vmem>>, vector<1x16x2xf32>
    %195 = vector.shape_cast %194 : vector<1x16x2xf32> to vector<16x2xf32>
    %c2_70 = arith.constant 2 : index
    %c0_71 = arith.constant 0 : index
    %c0_72 = arith.constant 0 : index
    %196 = vector.load %arg4[%c2_70, %c0_71, %c0_72] : memref<4x16x2xf32, #tpu.memory_space<vmem>>, vector<1x16x2xf32>
    %197 = vector.shape_cast %196 : vector<1x16x2xf32> to vector<16x2xf32>
    %c3_73 = arith.constant 3 : index
    %c0_74 = arith.constant 0 : index
    %c0_75 = arith.constant 0 : index
    %198 = vector.load %arg4[%c3_73, %c0_74, %c0_75] : memref<4x16x2xf32, #tpu.memory_space<vmem>>, vector<1x16x2xf32>
    %199 = vector.shape_cast %198 : vector<1x16x2xf32> to vector<16x2xf32>
    %200 = vector.broadcast %0 : f32 to vector<16x2xf32>
    %201 = arith.mulf %193, %200 : vector<16x2xf32>
    %202 = vector.broadcast %1 : f32 to vector<16x2xf32>
    %203 = arith.mulf %195, %202 : vector<16x2xf32>
    %204 = arith.addf %201, %203 : vector<16x2xf32>
    %205 = vector.broadcast %2 : f32 to vector<16x2xf32>
    %206 = arith.mulf %197, %205 : vector<16x2xf32>
    %207 = arith.addf %204, %206 : vector<16x2xf32>
    %208 = vector.broadcast %3 : f32 to vector<16x2xf32>
    %209 = arith.mulf %199, %208 : vector<16x2xf32>
    %210 = arith.addf %207, %209 : vector<16x2xf32>
    %211 = vector.broadcast %128 : f32 to vector<16x2xf32>
    %212 = arith.addf %210, %211 : vector<16x2xf32>
    %213 = math.tanh %212 : vector<16x2xf32>
    %214 = vector.broadcast %160 : f32 to vector<16x2xf32>
    %215 = arith.mulf %213, %214 : vector<16x2xf32>
    %216 = vector.broadcast %4 : f32 to vector<16x2xf32>
    %217 = arith.mulf %193, %216 : vector<16x2xf32>
    %218 = vector.broadcast %5 : f32 to vector<16x2xf32>
    %219 = arith.mulf %195, %218 : vector<16x2xf32>
    %220 = arith.addf %217, %219 : vector<16x2xf32>
    %221 = vector.broadcast %6 : f32 to vector<16x2xf32>
    %222 = arith.mulf %197, %221 : vector<16x2xf32>
    %223 = arith.addf %220, %222 : vector<16x2xf32>
    %224 = vector.broadcast %7 : f32 to vector<16x2xf32>
    %225 = arith.mulf %199, %224 : vector<16x2xf32>
    %226 = arith.addf %223, %225 : vector<16x2xf32>
    %227 = vector.broadcast %129 : f32 to vector<16x2xf32>
    %228 = arith.addf %226, %227 : vector<16x2xf32>
    %229 = math.tanh %228 : vector<16x2xf32>
    %230 = vector.broadcast %161 : f32 to vector<16x2xf32>
    %231 = arith.mulf %229, %230 : vector<16x2xf32>
    %232 = arith.addf %215, %231 : vector<16x2xf32>
    %233 = vector.broadcast %8 : f32 to vector<16x2xf32>
    %234 = arith.mulf %193, %233 : vector<16x2xf32>
    %235 = vector.broadcast %9 : f32 to vector<16x2xf32>
    %236 = arith.mulf %195, %235 : vector<16x2xf32>
    %237 = arith.addf %234, %236 : vector<16x2xf32>
    %238 = vector.broadcast %10 : f32 to vector<16x2xf32>
    %239 = arith.mulf %197, %238 : vector<16x2xf32>
    %240 = arith.addf %237, %239 : vector<16x2xf32>
    %241 = vector.broadcast %11 : f32 to vector<16x2xf32>
    %242 = arith.mulf %199, %241 : vector<16x2xf32>
    %243 = arith.addf %240, %242 : vector<16x2xf32>
    %244 = vector.broadcast %130 : f32 to vector<16x2xf32>
    %245 = arith.addf %243, %244 : vector<16x2xf32>
    %246 = math.tanh %245 : vector<16x2xf32>
    %247 = vector.broadcast %162 : f32 to vector<16x2xf32>
    %248 = arith.mulf %246, %247 : vector<16x2xf32>
    %249 = arith.addf %232, %248 : vector<16x2xf32>
    %250 = vector.broadcast %12 : f32 to vector<16x2xf32>
    %251 = arith.mulf %193, %250 : vector<16x2xf32>
    %252 = vector.broadcast %13 : f32 to vector<16x2xf32>
    %253 = arith.mulf %195, %252 : vector<16x2xf32>
    %254 = arith.addf %251, %253 : vector<16x2xf32>
    %255 = vector.broadcast %14 : f32 to vector<16x2xf32>
    %256 = arith.mulf %197, %255 : vector<16x2xf32>
    %257 = arith.addf %254, %256 : vector<16x2xf32>
    %258 = vector.broadcast %15 : f32 to vector<16x2xf32>
    %259 = arith.mulf %199, %258 : vector<16x2xf32>
    %260 = arith.addf %257, %259 : vector<16x2xf32>
    %261 = vector.broadcast %131 : f32 to vector<16x2xf32>
    %262 = arith.addf %260, %261 : vector<16x2xf32>
    %263 = math.tanh %262 : vector<16x2xf32>
    %264 = vector.broadcast %163 : f32 to vector<16x2xf32>
    %265 = arith.mulf %263, %264 : vector<16x2xf32>
    %266 = arith.addf %249, %265 : vector<16x2xf32>
    %267 = vector.broadcast %16 : f32 to vector<16x2xf32>
    %268 = arith.mulf %193, %267 : vector<16x2xf32>
    %269 = vector.broadcast %17 : f32 to vector<16x2xf32>
    %270 = arith.mulf %195, %269 : vector<16x2xf32>
    %271 = arith.addf %268, %270 : vector<16x2xf32>
    %272 = vector.broadcast %18 : f32 to vector<16x2xf32>
    %273 = arith.mulf %197, %272 : vector<16x2xf32>
    %274 = arith.addf %271, %273 : vector<16x2xf32>
    %275 = vector.broadcast %19 : f32 to vector<16x2xf32>
    %276 = arith.mulf %199, %275 : vector<16x2xf32>
    %277 = arith.addf %274, %276 : vector<16x2xf32>
    %278 = vector.broadcast %132 : f32 to vector<16x2xf32>
    %279 = arith.addf %277, %278 : vector<16x2xf32>
    %280 = math.tanh %279 : vector<16x2xf32>
    %281 = vector.broadcast %164 : f32 to vector<16x2xf32>
    %282 = arith.mulf %280, %281 : vector<16x2xf32>
    %283 = arith.addf %266, %282 : vector<16x2xf32>
    %284 = vector.broadcast %20 : f32 to vector<16x2xf32>
    %285 = arith.mulf %193, %284 : vector<16x2xf32>
    %286 = vector.broadcast %21 : f32 to vector<16x2xf32>
    %287 = arith.mulf %195, %286 : vector<16x2xf32>
    %288 = arith.addf %285, %287 : vector<16x2xf32>
    %289 = vector.broadcast %22 : f32 to vector<16x2xf32>
    %290 = arith.mulf %197, %289 : vector<16x2xf32>
    %291 = arith.addf %288, %290 : vector<16x2xf32>
    %292 = vector.broadcast %23 : f32 to vector<16x2xf32>
    %293 = arith.mulf %199, %292 : vector<16x2xf32>
    %294 = arith.addf %291, %293 : vector<16x2xf32>
    %295 = vector.broadcast %133 : f32 to vector<16x2xf32>
    %296 = arith.addf %294, %295 : vector<16x2xf32>
    %297 = math.tanh %296 : vector<16x2xf32>
    %298 = vector.broadcast %165 : f32 to vector<16x2xf32>
    %299 = arith.mulf %297, %298 : vector<16x2xf32>
    %300 = arith.addf %283, %299 : vector<16x2xf32>
    %301 = vector.broadcast %24 : f32 to vector<16x2xf32>
    %302 = arith.mulf %193, %301 : vector<16x2xf32>
    %303 = vector.broadcast %25 : f32 to vector<16x2xf32>
    %304 = arith.mulf %195, %303 : vector<16x2xf32>
    %305 = arith.addf %302, %304 : vector<16x2xf32>
    %306 = vector.broadcast %26 : f32 to vector<16x2xf32>
    %307 = arith.mulf %197, %306 : vector<16x2xf32>
    %308 = arith.addf %305, %307 : vector<16x2xf32>
    %309 = vector.broadcast %27 : f32 to vector<16x2xf32>
    %310 = arith.mulf %199, %309 : vector<16x2xf32>
    %311 = arith.addf %308, %310 : vector<16x2xf32>
    %312 = vector.broadcast %134 : f32 to vector<16x2xf32>
    %313 = arith.addf %311, %312 : vector<16x2xf32>
    %314 = math.tanh %313 : vector<16x2xf32>
    %315 = vector.broadcast %166 : f32 to vector<16x2xf32>
    %316 = arith.mulf %314, %315 : vector<16x2xf32>
    %317 = arith.addf %300, %316 : vector<16x2xf32>
    %318 = vector.broadcast %28 : f32 to vector<16x2xf32>
    %319 = arith.mulf %193, %318 : vector<16x2xf32>
    %320 = vector.broadcast %29 : f32 to vector<16x2xf32>
    %321 = arith.mulf %195, %320 : vector<16x2xf32>
    %322 = arith.addf %319, %321 : vector<16x2xf32>
    %323 = vector.broadcast %30 : f32 to vector<16x2xf32>
    %324 = arith.mulf %197, %323 : vector<16x2xf32>
    %325 = arith.addf %322, %324 : vector<16x2xf32>
    %326 = vector.broadcast %31 : f32 to vector<16x2xf32>
    %327 = arith.mulf %199, %326 : vector<16x2xf32>
    %328 = arith.addf %325, %327 : vector<16x2xf32>
    %329 = vector.broadcast %135 : f32 to vector<16x2xf32>
    %330 = arith.addf %328, %329 : vector<16x2xf32>
    %331 = math.tanh %330 : vector<16x2xf32>
    %332 = vector.broadcast %167 : f32 to vector<16x2xf32>
    %333 = arith.mulf %331, %332 : vector<16x2xf32>
    %334 = arith.addf %317, %333 : vector<16x2xf32>
    %335 = vector.broadcast %32 : f32 to vector<16x2xf32>
    %336 = arith.mulf %193, %335 : vector<16x2xf32>
    %337 = vector.broadcast %33 : f32 to vector<16x2xf32>
    %338 = arith.mulf %195, %337 : vector<16x2xf32>
    %339 = arith.addf %336, %338 : vector<16x2xf32>
    %340 = vector.broadcast %34 : f32 to vector<16x2xf32>
    %341 = arith.mulf %197, %340 : vector<16x2xf32>
    %342 = arith.addf %339, %341 : vector<16x2xf32>
    %343 = vector.broadcast %35 : f32 to vector<16x2xf32>
    %344 = arith.mulf %199, %343 : vector<16x2xf32>
    %345 = arith.addf %342, %344 : vector<16x2xf32>
    %346 = vector.broadcast %136 : f32 to vector<16x2xf32>
    %347 = arith.addf %345, %346 : vector<16x2xf32>
    %348 = math.tanh %347 : vector<16x2xf32>
    %349 = vector.broadcast %168 : f32 to vector<16x2xf32>
    %350 = arith.mulf %348, %349 : vector<16x2xf32>
    %351 = arith.addf %334, %350 : vector<16x2xf32>
    %352 = vector.broadcast %36 : f32 to vector<16x2xf32>
    %353 = arith.mulf %193, %352 : vector<16x2xf32>
    %354 = vector.broadcast %37 : f32 to vector<16x2xf32>
    %355 = arith.mulf %195, %354 : vector<16x2xf32>
    %356 = arith.addf %353, %355 : vector<16x2xf32>
    %357 = vector.broadcast %38 : f32 to vector<16x2xf32>
    %358 = arith.mulf %197, %357 : vector<16x2xf32>
    %359 = arith.addf %356, %358 : vector<16x2xf32>
    %360 = vector.broadcast %39 : f32 to vector<16x2xf32>
    %361 = arith.mulf %199, %360 : vector<16x2xf32>
    %362 = arith.addf %359, %361 : vector<16x2xf32>
    %363 = vector.broadcast %137 : f32 to vector<16x2xf32>
    %364 = arith.addf %362, %363 : vector<16x2xf32>
    %365 = math.tanh %364 : vector<16x2xf32>
    %366 = vector.broadcast %169 : f32 to vector<16x2xf32>
    %367 = arith.mulf %365, %366 : vector<16x2xf32>
    %368 = arith.addf %351, %367 : vector<16x2xf32>
    %369 = vector.broadcast %40 : f32 to vector<16x2xf32>
    %370 = arith.mulf %193, %369 : vector<16x2xf32>
    %371 = vector.broadcast %41 : f32 to vector<16x2xf32>
    %372 = arith.mulf %195, %371 : vector<16x2xf32>
    %373 = arith.addf %370, %372 : vector<16x2xf32>
    %374 = vector.broadcast %42 : f32 to vector<16x2xf32>
    %375 = arith.mulf %197, %374 : vector<16x2xf32>
    %376 = arith.addf %373, %375 : vector<16x2xf32>
    %377 = vector.broadcast %43 : f32 to vector<16x2xf32>
    %378 = arith.mulf %199, %377 : vector<16x2xf32>
    %379 = arith.addf %376, %378 : vector<16x2xf32>
    %380 = vector.broadcast %138 : f32 to vector<16x2xf32>
    %381 = arith.addf %379, %380 : vector<16x2xf32>
    %382 = math.tanh %381 : vector<16x2xf32>
    %383 = vector.broadcast %170 : f32 to vector<16x2xf32>
    %384 = arith.mulf %382, %383 : vector<16x2xf32>
    %385 = arith.addf %368, %384 : vector<16x2xf32>
    %386 = vector.broadcast %44 : f32 to vector<16x2xf32>
    %387 = arith.mulf %193, %386 : vector<16x2xf32>
    %388 = vector.broadcast %45 : f32 to vector<16x2xf32>
    %389 = arith.mulf %195, %388 : vector<16x2xf32>
    %390 = arith.addf %387, %389 : vector<16x2xf32>
    %391 = vector.broadcast %46 : f32 to vector<16x2xf32>
    %392 = arith.mulf %197, %391 : vector<16x2xf32>
    %393 = arith.addf %390, %392 : vector<16x2xf32>
    %394 = vector.broadcast %47 : f32 to vector<16x2xf32>
    %395 = arith.mulf %199, %394 : vector<16x2xf32>
    %396 = arith.addf %393, %395 : vector<16x2xf32>
    %397 = vector.broadcast %139 : f32 to vector<16x2xf32>
    %398 = arith.addf %396, %397 : vector<16x2xf32>
    %399 = math.tanh %398 : vector<16x2xf32>
    %400 = vector.broadcast %171 : f32 to vector<16x2xf32>
    %401 = arith.mulf %399, %400 : vector<16x2xf32>
    %402 = arith.addf %385, %401 : vector<16x2xf32>
    %403 = vector.broadcast %48 : f32 to vector<16x2xf32>
    %404 = arith.mulf %193, %403 : vector<16x2xf32>
    %405 = vector.broadcast %49 : f32 to vector<16x2xf32>
    %406 = arith.mulf %195, %405 : vector<16x2xf32>
    %407 = arith.addf %404, %406 : vector<16x2xf32>
    %408 = vector.broadcast %50 : f32 to vector<16x2xf32>
    %409 = arith.mulf %197, %408 : vector<16x2xf32>
    %410 = arith.addf %407, %409 : vector<16x2xf32>
    %411 = vector.broadcast %51 : f32 to vector<16x2xf32>
    %412 = arith.mulf %199, %411 : vector<16x2xf32>
    %413 = arith.addf %410, %412 : vector<16x2xf32>
    %414 = vector.broadcast %140 : f32 to vector<16x2xf32>
    %415 = arith.addf %413, %414 : vector<16x2xf32>
    %416 = math.tanh %415 : vector<16x2xf32>
    %417 = vector.broadcast %172 : f32 to vector<16x2xf32>
    %418 = arith.mulf %416, %417 : vector<16x2xf32>
    %419 = arith.addf %402, %418 : vector<16x2xf32>
    %420 = vector.broadcast %52 : f32 to vector<16x2xf32>
    %421 = arith.mulf %193, %420 : vector<16x2xf32>
    %422 = vector.broadcast %53 : f32 to vector<16x2xf32>
    %423 = arith.mulf %195, %422 : vector<16x2xf32>
    %424 = arith.addf %421, %423 : vector<16x2xf32>
    %425 = vector.broadcast %54 : f32 to vector<16x2xf32>
    %426 = arith.mulf %197, %425 : vector<16x2xf32>
    %427 = arith.addf %424, %426 : vector<16x2xf32>
    %428 = vector.broadcast %55 : f32 to vector<16x2xf32>
    %429 = arith.mulf %199, %428 : vector<16x2xf32>
    %430 = arith.addf %427, %429 : vector<16x2xf32>
    %431 = vector.broadcast %141 : f32 to vector<16x2xf32>
    %432 = arith.addf %430, %431 : vector<16x2xf32>
    %433 = math.tanh %432 : vector<16x2xf32>
    %434 = vector.broadcast %173 : f32 to vector<16x2xf32>
    %435 = arith.mulf %433, %434 : vector<16x2xf32>
    %436 = arith.addf %419, %435 : vector<16x2xf32>
    %437 = vector.broadcast %56 : f32 to vector<16x2xf32>
    %438 = arith.mulf %193, %437 : vector<16x2xf32>
    %439 = vector.broadcast %57 : f32 to vector<16x2xf32>
    %440 = arith.mulf %195, %439 : vector<16x2xf32>
    %441 = arith.addf %438, %440 : vector<16x2xf32>
    %442 = vector.broadcast %58 : f32 to vector<16x2xf32>
    %443 = arith.mulf %197, %442 : vector<16x2xf32>
    %444 = arith.addf %441, %443 : vector<16x2xf32>
    %445 = vector.broadcast %59 : f32 to vector<16x2xf32>
    %446 = arith.mulf %199, %445 : vector<16x2xf32>
    %447 = arith.addf %444, %446 : vector<16x2xf32>
    %448 = vector.broadcast %142 : f32 to vector<16x2xf32>
    %449 = arith.addf %447, %448 : vector<16x2xf32>
    %450 = math.tanh %449 : vector<16x2xf32>
    %451 = vector.broadcast %174 : f32 to vector<16x2xf32>
    %452 = arith.mulf %450, %451 : vector<16x2xf32>
    %453 = arith.addf %436, %452 : vector<16x2xf32>
    %454 = vector.broadcast %60 : f32 to vector<16x2xf32>
    %455 = arith.mulf %193, %454 : vector<16x2xf32>
    %456 = vector.broadcast %61 : f32 to vector<16x2xf32>
    %457 = arith.mulf %195, %456 : vector<16x2xf32>
    %458 = arith.addf %455, %457 : vector<16x2xf32>
    %459 = vector.broadcast %62 : f32 to vector<16x2xf32>
    %460 = arith.mulf %197, %459 : vector<16x2xf32>
    %461 = arith.addf %458, %460 : vector<16x2xf32>
    %462 = vector.broadcast %63 : f32 to vector<16x2xf32>
    %463 = arith.mulf %199, %462 : vector<16x2xf32>
    %464 = arith.addf %461, %463 : vector<16x2xf32>
    %465 = vector.broadcast %143 : f32 to vector<16x2xf32>
    %466 = arith.addf %464, %465 : vector<16x2xf32>
    %467 = math.tanh %466 : vector<16x2xf32>
    %468 = vector.broadcast %175 : f32 to vector<16x2xf32>
    %469 = arith.mulf %467, %468 : vector<16x2xf32>
    %470 = arith.addf %453, %469 : vector<16x2xf32>
    %471 = vector.broadcast %64 : f32 to vector<16x2xf32>
    %472 = arith.mulf %193, %471 : vector<16x2xf32>
    %473 = vector.broadcast %65 : f32 to vector<16x2xf32>
    %474 = arith.mulf %195, %473 : vector<16x2xf32>
    %475 = arith.addf %472, %474 : vector<16x2xf32>
    %476 = vector.broadcast %66 : f32 to vector<16x2xf32>
    %477 = arith.mulf %197, %476 : vector<16x2xf32>
    %478 = arith.addf %475, %477 : vector<16x2xf32>
    %479 = vector.broadcast %67 : f32 to vector<16x2xf32>
    %480 = arith.mulf %199, %479 : vector<16x2xf32>
    %481 = arith.addf %478, %480 : vector<16x2xf32>
    %482 = vector.broadcast %144 : f32 to vector<16x2xf32>
    %483 = arith.addf %481, %482 : vector<16x2xf32>
    %484 = math.tanh %483 : vector<16x2xf32>
    %485 = vector.broadcast %176 : f32 to vector<16x2xf32>
    %486 = arith.mulf %484, %485 : vector<16x2xf32>
    %487 = arith.addf %470, %486 : vector<16x2xf32>
    %488 = vector.broadcast %68 : f32 to vector<16x2xf32>
    %489 = arith.mulf %193, %488 : vector<16x2xf32>
    %490 = vector.broadcast %69 : f32 to vector<16x2xf32>
    %491 = arith.mulf %195, %490 : vector<16x2xf32>
    %492 = arith.addf %489, %491 : vector<16x2xf32>
    %493 = vector.broadcast %70 : f32 to vector<16x2xf32>
    %494 = arith.mulf %197, %493 : vector<16x2xf32>
    %495 = arith.addf %492, %494 : vector<16x2xf32>
    %496 = vector.broadcast %71 : f32 to vector<16x2xf32>
    %497 = arith.mulf %199, %496 : vector<16x2xf32>
    %498 = arith.addf %495, %497 : vector<16x2xf32>
    %499 = vector.broadcast %145 : f32 to vector<16x2xf32>
    %500 = arith.addf %498, %499 : vector<16x2xf32>
    %501 = math.tanh %500 : vector<16x2xf32>
    %502 = vector.broadcast %177 : f32 to vector<16x2xf32>
    %503 = arith.mulf %501, %502 : vector<16x2xf32>
    %504 = arith.addf %487, %503 : vector<16x2xf32>
    %505 = vector.broadcast %72 : f32 to vector<16x2xf32>
    %506 = arith.mulf %193, %505 : vector<16x2xf32>
    %507 = vector.broadcast %73 : f32 to vector<16x2xf32>
    %508 = arith.mulf %195, %507 : vector<16x2xf32>
    %509 = arith.addf %506, %508 : vector<16x2xf32>
    %510 = vector.broadcast %74 : f32 to vector<16x2xf32>
    %511 = arith.mulf %197, %510 : vector<16x2xf32>
    %512 = arith.addf %509, %511 : vector<16x2xf32>
    %513 = vector.broadcast %75 : f32 to vector<16x2xf32>
    %514 = arith.mulf %199, %513 : vector<16x2xf32>
    %515 = arith.addf %512, %514 : vector<16x2xf32>
    %516 = vector.broadcast %146 : f32 to vector<16x2xf32>
    %517 = arith.addf %515, %516 : vector<16x2xf32>
    %518 = math.tanh %517 : vector<16x2xf32>
    %519 = vector.broadcast %178 : f32 to vector<16x2xf32>
    %520 = arith.mulf %518, %519 : vector<16x2xf32>
    %521 = arith.addf %504, %520 : vector<16x2xf32>
    %522 = vector.broadcast %76 : f32 to vector<16x2xf32>
    %523 = arith.mulf %193, %522 : vector<16x2xf32>
    %524 = vector.broadcast %77 : f32 to vector<16x2xf32>
    %525 = arith.mulf %195, %524 : vector<16x2xf32>
    %526 = arith.addf %523, %525 : vector<16x2xf32>
    %527 = vector.broadcast %78 : f32 to vector<16x2xf32>
    %528 = arith.mulf %197, %527 : vector<16x2xf32>
    %529 = arith.addf %526, %528 : vector<16x2xf32>
    %530 = vector.broadcast %79 : f32 to vector<16x2xf32>
    %531 = arith.mulf %199, %530 : vector<16x2xf32>
    %532 = arith.addf %529, %531 : vector<16x2xf32>
    %533 = vector.broadcast %147 : f32 to vector<16x2xf32>
    %534 = arith.addf %532, %533 : vector<16x2xf32>
    %535 = math.tanh %534 : vector<16x2xf32>
    %536 = vector.broadcast %179 : f32 to vector<16x2xf32>
    %537 = arith.mulf %535, %536 : vector<16x2xf32>
    %538 = arith.addf %521, %537 : vector<16x2xf32>
    %539 = vector.broadcast %80 : f32 to vector<16x2xf32>
    %540 = arith.mulf %193, %539 : vector<16x2xf32>
    %541 = vector.broadcast %81 : f32 to vector<16x2xf32>
    %542 = arith.mulf %195, %541 : vector<16x2xf32>
    %543 = arith.addf %540, %542 : vector<16x2xf32>
    %544 = vector.broadcast %82 : f32 to vector<16x2xf32>
    %545 = arith.mulf %197, %544 : vector<16x2xf32>
    %546 = arith.addf %543, %545 : vector<16x2xf32>
    %547 = vector.broadcast %83 : f32 to vector<16x2xf32>
    %548 = arith.mulf %199, %547 : vector<16x2xf32>
    %549 = arith.addf %546, %548 : vector<16x2xf32>
    %550 = vector.broadcast %148 : f32 to vector<16x2xf32>
    %551 = arith.addf %549, %550 : vector<16x2xf32>
    %552 = math.tanh %551 : vector<16x2xf32>
    %553 = vector.broadcast %180 : f32 to vector<16x2xf32>
    %554 = arith.mulf %552, %553 : vector<16x2xf32>
    %555 = arith.addf %538, %554 : vector<16x2xf32>
    %556 = vector.broadcast %84 : f32 to vector<16x2xf32>
    %557 = arith.mulf %193, %556 : vector<16x2xf32>
    %558 = vector.broadcast %85 : f32 to vector<16x2xf32>
    %559 = arith.mulf %195, %558 : vector<16x2xf32>
    %560 = arith.addf %557, %559 : vector<16x2xf32>
    %561 = vector.broadcast %86 : f32 to vector<16x2xf32>
    %562 = arith.mulf %197, %561 : vector<16x2xf32>
    %563 = arith.addf %560, %562 : vector<16x2xf32>
    %564 = vector.broadcast %87 : f32 to vector<16x2xf32>
    %565 = arith.mulf %199, %564 : vector<16x2xf32>
    %566 = arith.addf %563, %565 : vector<16x2xf32>
    %567 = vector.broadcast %149 : f32 to vector<16x2xf32>
    %568 = arith.addf %566, %567 : vector<16x2xf32>
    %569 = math.tanh %568 : vector<16x2xf32>
    %570 = vector.broadcast %181 : f32 to vector<16x2xf32>
    %571 = arith.mulf %569, %570 : vector<16x2xf32>
    %572 = arith.addf %555, %571 : vector<16x2xf32>
    %573 = vector.broadcast %88 : f32 to vector<16x2xf32>
    %574 = arith.mulf %193, %573 : vector<16x2xf32>
    %575 = vector.broadcast %89 : f32 to vector<16x2xf32>
    %576 = arith.mulf %195, %575 : vector<16x2xf32>
    %577 = arith.addf %574, %576 : vector<16x2xf32>
    %578 = vector.broadcast %90 : f32 to vector<16x2xf32>
    %579 = arith.mulf %197, %578 : vector<16x2xf32>
    %580 = arith.addf %577, %579 : vector<16x2xf32>
    %581 = vector.broadcast %91 : f32 to vector<16x2xf32>
    %582 = arith.mulf %199, %581 : vector<16x2xf32>
    %583 = arith.addf %580, %582 : vector<16x2xf32>
    %584 = vector.broadcast %150 : f32 to vector<16x2xf32>
    %585 = arith.addf %583, %584 : vector<16x2xf32>
    %586 = math.tanh %585 : vector<16x2xf32>
    %587 = vector.broadcast %182 : f32 to vector<16x2xf32>
    %588 = arith.mulf %586, %587 : vector<16x2xf32>
    %589 = arith.addf %572, %588 : vector<16x2xf32>
    %590 = vector.broadcast %92 : f32 to vector<16x2xf32>
    %591 = arith.mulf %193, %590 : vector<16x2xf32>
    %592 = vector.broadcast %93 : f32 to vector<16x2xf32>
    %593 = arith.mulf %195, %592 : vector<16x2xf32>
    %594 = arith.addf %591, %593 : vector<16x2xf32>
    %595 = vector.broadcast %94 : f32 to vector<16x2xf32>
    %596 = arith.mulf %197, %595 : vector<16x2xf32>
    %597 = arith.addf %594, %596 : vector<16x2xf32>
    %598 = vector.broadcast %95 : f32 to vector<16x2xf32>
    %599 = arith.mulf %199, %598 : vector<16x2xf32>
    %600 = arith.addf %597, %599 : vector<16x2xf32>
    %601 = vector.broadcast %151 : f32 to vector<16x2xf32>
    %602 = arith.addf %600, %601 : vector<16x2xf32>
    %603 = math.tanh %602 : vector<16x2xf32>
    %604 = vector.broadcast %183 : f32 to vector<16x2xf32>
    %605 = arith.mulf %603, %604 : vector<16x2xf32>
    %606 = arith.addf %589, %605 : vector<16x2xf32>
    %607 = vector.broadcast %96 : f32 to vector<16x2xf32>
    %608 = arith.mulf %193, %607 : vector<16x2xf32>
    %609 = vector.broadcast %97 : f32 to vector<16x2xf32>
    %610 = arith.mulf %195, %609 : vector<16x2xf32>
    %611 = arith.addf %608, %610 : vector<16x2xf32>
    %612 = vector.broadcast %98 : f32 to vector<16x2xf32>
    %613 = arith.mulf %197, %612 : vector<16x2xf32>
    %614 = arith.addf %611, %613 : vector<16x2xf32>
    %615 = vector.broadcast %99 : f32 to vector<16x2xf32>
    %616 = arith.mulf %199, %615 : vector<16x2xf32>
    %617 = arith.addf %614, %616 : vector<16x2xf32>
    %618 = vector.broadcast %152 : f32 to vector<16x2xf32>
    %619 = arith.addf %617, %618 : vector<16x2xf32>
    %620 = math.tanh %619 : vector<16x2xf32>
    %621 = vector.broadcast %184 : f32 to vector<16x2xf32>
    %622 = arith.mulf %620, %621 : vector<16x2xf32>
    %623 = arith.addf %606, %622 : vector<16x2xf32>
    %624 = vector.broadcast %100 : f32 to vector<16x2xf32>
    %625 = arith.mulf %193, %624 : vector<16x2xf32>
    %626 = vector.broadcast %101 : f32 to vector<16x2xf32>
    %627 = arith.mulf %195, %626 : vector<16x2xf32>
    %628 = arith.addf %625, %627 : vector<16x2xf32>
    %629 = vector.broadcast %102 : f32 to vector<16x2xf32>
    %630 = arith.mulf %197, %629 : vector<16x2xf32>
    %631 = arith.addf %628, %630 : vector<16x2xf32>
    %632 = vector.broadcast %103 : f32 to vector<16x2xf32>
    %633 = arith.mulf %199, %632 : vector<16x2xf32>
    %634 = arith.addf %631, %633 : vector<16x2xf32>
    %635 = vector.broadcast %153 : f32 to vector<16x2xf32>
    %636 = arith.addf %634, %635 : vector<16x2xf32>
    %637 = math.tanh %636 : vector<16x2xf32>
    %638 = vector.broadcast %185 : f32 to vector<16x2xf32>
    %639 = arith.mulf %637, %638 : vector<16x2xf32>
    %640 = arith.addf %623, %639 : vector<16x2xf32>
    %641 = vector.broadcast %104 : f32 to vector<16x2xf32>
    %642 = arith.mulf %193, %641 : vector<16x2xf32>
    %643 = vector.broadcast %105 : f32 to vector<16x2xf32>
    %644 = arith.mulf %195, %643 : vector<16x2xf32>
    %645 = arith.addf %642, %644 : vector<16x2xf32>
    %646 = vector.broadcast %106 : f32 to vector<16x2xf32>
    %647 = arith.mulf %197, %646 : vector<16x2xf32>
    %648 = arith.addf %645, %647 : vector<16x2xf32>
    %649 = vector.broadcast %107 : f32 to vector<16x2xf32>
    %650 = arith.mulf %199, %649 : vector<16x2xf32>
    %651 = arith.addf %648, %650 : vector<16x2xf32>
    %652 = vector.broadcast %154 : f32 to vector<16x2xf32>
    %653 = arith.addf %651, %652 : vector<16x2xf32>
    %654 = math.tanh %653 : vector<16x2xf32>
    %655 = vector.broadcast %186 : f32 to vector<16x2xf32>
    %656 = arith.mulf %654, %655 : vector<16x2xf32>
    %657 = arith.addf %640, %656 : vector<16x2xf32>
    %658 = vector.broadcast %108 : f32 to vector<16x2xf32>
    %659 = arith.mulf %193, %658 : vector<16x2xf32>
    %660 = vector.broadcast %109 : f32 to vector<16x2xf32>
    %661 = arith.mulf %195, %660 : vector<16x2xf32>
    %662 = arith.addf %659, %661 : vector<16x2xf32>
    %663 = vector.broadcast %110 : f32 to vector<16x2xf32>
    %664 = arith.mulf %197, %663 : vector<16x2xf32>
    %665 = arith.addf %662, %664 : vector<16x2xf32>
    %666 = vector.broadcast %111 : f32 to vector<16x2xf32>
    %667 = arith.mulf %199, %666 : vector<16x2xf32>
    %668 = arith.addf %665, %667 : vector<16x2xf32>
    %669 = vector.broadcast %155 : f32 to vector<16x2xf32>
    %670 = arith.addf %668, %669 : vector<16x2xf32>
    %671 = math.tanh %670 : vector<16x2xf32>
    %672 = vector.broadcast %187 : f32 to vector<16x2xf32>
    %673 = arith.mulf %671, %672 : vector<16x2xf32>
    %674 = arith.addf %657, %673 : vector<16x2xf32>
    %675 = vector.broadcast %112 : f32 to vector<16x2xf32>
    %676 = arith.mulf %193, %675 : vector<16x2xf32>
    %677 = vector.broadcast %113 : f32 to vector<16x2xf32>
    %678 = arith.mulf %195, %677 : vector<16x2xf32>
    %679 = arith.addf %676, %678 : vector<16x2xf32>
    %680 = vector.broadcast %114 : f32 to vector<16x2xf32>
    %681 = arith.mulf %197, %680 : vector<16x2xf32>
    %682 = arith.addf %679, %681 : vector<16x2xf32>
    %683 = vector.broadcast %115 : f32 to vector<16x2xf32>
    %684 = arith.mulf %199, %683 : vector<16x2xf32>
    %685 = arith.addf %682, %684 : vector<16x2xf32>
    %686 = vector.broadcast %156 : f32 to vector<16x2xf32>
    %687 = arith.addf %685, %686 : vector<16x2xf32>
    %688 = math.tanh %687 : vector<16x2xf32>
    %689 = vector.broadcast %188 : f32 to vector<16x2xf32>
    %690 = arith.mulf %688, %689 : vector<16x2xf32>
    %691 = arith.addf %674, %690 : vector<16x2xf32>
    %692 = vector.broadcast %116 : f32 to vector<16x2xf32>
    %693 = arith.mulf %193, %692 : vector<16x2xf32>
    %694 = vector.broadcast %117 : f32 to vector<16x2xf32>
    %695 = arith.mulf %195, %694 : vector<16x2xf32>
    %696 = arith.addf %693, %695 : vector<16x2xf32>
    %697 = vector.broadcast %118 : f32 to vector<16x2xf32>
    %698 = arith.mulf %197, %697 : vector<16x2xf32>
    %699 = arith.addf %696, %698 : vector<16x2xf32>
    %700 = vector.broadcast %119 : f32 to vector<16x2xf32>
    %701 = arith.mulf %199, %700 : vector<16x2xf32>
    %702 = arith.addf %699, %701 : vector<16x2xf32>
    %703 = vector.broadcast %157 : f32 to vector<16x2xf32>
    %704 = arith.addf %702, %703 : vector<16x2xf32>
    %705 = math.tanh %704 : vector<16x2xf32>
    %706 = vector.broadcast %189 : f32 to vector<16x2xf32>
    %707 = arith.mulf %705, %706 : vector<16x2xf32>
    %708 = arith.addf %691, %707 : vector<16x2xf32>
    %709 = vector.broadcast %120 : f32 to vector<16x2xf32>
    %710 = arith.mulf %193, %709 : vector<16x2xf32>
    %711 = vector.broadcast %121 : f32 to vector<16x2xf32>
    %712 = arith.mulf %195, %711 : vector<16x2xf32>
    %713 = arith.addf %710, %712 : vector<16x2xf32>
    %714 = vector.broadcast %122 : f32 to vector<16x2xf32>
    %715 = arith.mulf %197, %714 : vector<16x2xf32>
    %716 = arith.addf %713, %715 : vector<16x2xf32>
    %717 = vector.broadcast %123 : f32 to vector<16x2xf32>
    %718 = arith.mulf %199, %717 : vector<16x2xf32>
    %719 = arith.addf %716, %718 : vector<16x2xf32>
    %720 = vector.broadcast %158 : f32 to vector<16x2xf32>
    %721 = arith.addf %719, %720 : vector<16x2xf32>
    %722 = math.tanh %721 : vector<16x2xf32>
    %723 = vector.broadcast %190 : f32 to vector<16x2xf32>
    %724 = arith.mulf %722, %723 : vector<16x2xf32>
    %725 = arith.addf %708, %724 : vector<16x2xf32>
    %726 = vector.broadcast %124 : f32 to vector<16x2xf32>
    %727 = arith.mulf %193, %726 : vector<16x2xf32>
    %728 = vector.broadcast %125 : f32 to vector<16x2xf32>
    %729 = arith.mulf %195, %728 : vector<16x2xf32>
    %730 = arith.addf %727, %729 : vector<16x2xf32>
    %731 = vector.broadcast %126 : f32 to vector<16x2xf32>
    %732 = arith.mulf %197, %731 : vector<16x2xf32>
    %733 = arith.addf %730, %732 : vector<16x2xf32>
    %734 = vector.broadcast %127 : f32 to vector<16x2xf32>
    %735 = arith.mulf %199, %734 : vector<16x2xf32>
    %736 = arith.addf %733, %735 : vector<16x2xf32>
    %737 = vector.broadcast %159 : f32 to vector<16x2xf32>
    %738 = arith.addf %736, %737 : vector<16x2xf32>
    %739 = math.tanh %738 : vector<16x2xf32>
    %740 = vector.broadcast %191 : f32 to vector<16x2xf32>
    %741 = arith.mulf %739, %740 : vector<16x2xf32>
    %742 = arith.addf %725, %741 : vector<16x2xf32>
    %cst = arith.constant dense<0xFF800000> : vector<2xf32>
    %743 = vector.multi_reduction <maximumf>, %742, %cst [0] : vector<16x2xf32> to vector<2xf32>
    %744 = vector.shape_cast %743 : vector<2xf32> to vector<1x2xf32>
    %745 = vector.broadcast %744 : vector<1x2xf32> to vector<16x2xf32>
    %746 = arith.subf %742, %745 : vector<16x2xf32>
    %747 = math.exp %746 : vector<16x2xf32>
    %cst_76 = arith.constant dense<0.000000e+00> : vector<2xf32>
    %748 = vector.multi_reduction <add>, %747, %cst_76 [0] : vector<16x2xf32> to vector<2xf32>
    %749 = vector.shape_cast %748 : vector<2xf32> to vector<1x2xf32>
    %750 = tpu.reciprocal %749 {approx = true} : vector<1x2xf32> -> vector<1x2xf32>
    %751 = vector.broadcast %750 : vector<1x2xf32> to vector<16x2xf32>
    %752 = arith.mulf %747, %751 : vector<16x2xf32>
    %c0_77 = arith.constant 0 : index
    %c0_78 = arith.constant 0 : index
    %753 = vector.load %arg5[%c0_77, %c0_78] : memref<16x2xf32, #tpu.memory_space<vmem>>, vector<16x2xf32>
    tpu.vector_store %arg5[%c0_77, %c0_78], %752 {strides = array<i32>} : memref<16x2xf32, #tpu.memory_space<vmem>>, vector<16x2xf32>,
    return
  }
  func.func @transform_0(%arg0: i32) -> i32 {
    %c0_i32 = arith.constant 0 : i32
    %c0_i32_0 = arith.constant 0 : i32
    return %c0_i32 : i32
  }
  func.func @transform_1(%arg0: i32) -> i32 {
    %c0_i32 = arith.constant 0 : i32
    %c0_i32_0 = arith.constant 0 : i32
    return %c0_i32 : i32
  }
  func.func @transform_2(%arg0: i32) -> i32 {
    %c0_i32 = arith.constant 0 : i32
    %c0_i32_0 = arith.constant 0 : i32
    return %c0_i32 : i32
  }
  func.func @transform_3(%arg0: i32) -> (i32, i32, i32) {
    %c0_i32 = arith.constant 0 : i32
    %c0_i32_0 = arith.constant 0 : i32
    %c0_i32_1 = arith.constant 0 : i32
    return %c0_i32, %c0_i32_0, %arg0 : i32, i32, i32
  }
  func.func @transform_4(%arg0: i32) -> (i32, i32) {
    %c0_i32 = arith.constant 0 : i32
    %c0_i32_0 = arith.constant 0 : i32
    return %c0_i32, %arg0 : i32, i32
  }
}

</mosaic_0001>

<bundles_post_ra>
// kernel: tpu_custom_call.1
= control target key start
LH: loop header
LB: loop body
LE: loop exit
PB: predicated region body
PF: predicated region fallthrough
CT: control target
= control target key end

     0   :  { %9 = vsyncpa [#allocation3], 0  ;;  %s2728_s0 = inlined_call_operand.vmem [shape: f32[128], index: 0, kind: input, shape index: {}]   ;;  %s2729_s1 = inlined_call_operand.vmem [shape: f32[32], index: 1, kind: input, shape index: {}]   ;;  %s2730_s2 = inlined_call_operand.vmem [shape: f32[32], index: 2, kind: input, shape index: {}]   ;;  %s2731_s3 = inlined_call_operand.vmem [shape: f32[4,16,2], index: 3, kind: input, shape index: {}]   ;;  %s2732_s4 = inlined_call_operand.vmem [shape: f32[16,2], index: 4, kind: output, shape index: {}]  }
   0x1   :  { %10 = vsyncpa [#allocation5], 0  ;;  %s27_s17 = sshll.u32 %s2729_s1, 4  ;;  %s17_s20 = sshll.u32 %s2728_s0, 4  ;;  %s28_s17 = int_to_ptr.vmem [resolvable:$true] %s27_s17  ;;  %s18_s20 = int_to_ptr.vmem [resolvable:$true] %s17_s20 }
   0x2   :  { %s1534_s21 = scalar_lea.vmem %s28_s17, 16  ;;  %p1539_p1 = scmp.lt.s32.totalorder %s28_s17, %s28_s17 }
   0x3   :  { %p1535_p0 = scmp.ne.s32.totalorder %s28_s17, %s1534_s21  ;;  %p1540_p2 = scmp.lt.s32.totalorder %s1534_s21, %s1534_s21 }
   0x5   :  { %p1541_p3 = por %p1540_p2, %p1539_p1 }
   0x7   :  { %p1542_p4 = pnand %p1541_p3, %p1535_p0 }
   0x9   :  { %1545 = shalt.err (!%p1542_p4)
}
   0xa   :  { %s1574_s22 = smov [#allocation4]   ;;  %s1546_s23 = scalar_lea.vmem %s18_s20, 16 }
   0xb   :  { %30 = dma.vmem_to_smem %s28_s17, 16, %s1574_s22, [#allocation5]  }
   0xc   :  { %p1547_p5 = scmp.ne.s32.totalorder %s18_s20, %s1546_s23  ;;  %p1551_p6 = scmp.lt.s32.totalorder %s18_s20, %s18_s20 }
   0xd   :  { %p1552_p7 = scmp.lt.s32.totalorder %s1546_s23, %s1546_s23 }
   0xf   :  { %p1553_p8 = por %p1552_p7, %p1551_p6 }
  0x11   :  { %p1554_p9 = pnand %p1553_p8, %p1547_p5 }
  0x13   :  { %1557 = shalt.err (!%p1554_p9)
}
  0x14   :  { %s1575_s1 = smov [#allocation2]   ;;  %s37_s25 = sshll.u32 %s2730_s2, 4  ;;  %s38_s25 = int_to_ptr.vmem [resolvable:$true] %s37_s25 }
  0x15   :  { %20 = dma.vmem_to_smem %s18_s20, 16, %s1575_s1, [#allocation3]  }
  0x16   :  { %s1558_s26 = scalar_lea.vmem %s38_s25, 16  ;;  %p1563_p11 = scmp.lt.s32.totalorder %s38_s25, %s38_s25 }
  0x17   :  { %p1559_p10 = scmp.ne.s32.totalorder %s38_s25, %s1558_s26  ;;  %p1564_p12 = scmp.lt.s32.totalorder %s1558_s26, %s1558_s26 }
  0x19   :  { %p1565_p13 = por %p1564_p12, %p1563_p11 }
  0x1b   :  { %p1566_p0 = pnand %p1565_p13, %p1559_p10 }
  0x1d   :  { %1569 = shalt.err (!%p1566_p0)
}
  0x1e   :  { %s1576_s27 = smov [#allocation6]  }
  0x1f   :  { %40 = dma.vmem_to_smem %s38_s25, 16, %s1576_s27, [#allocation5]  }
  0x20   :  { %1570 = dma.done.wait [#allocation3], 16  }
  0x21   :  { %1571 = vsyncadd [#allocation3], 4294967280 }
  0x22   :  { %1572 = dma.done.wait [#allocation5], 32  }
  0x23   :  { %1573 = vsyncadd [#allocation5], 4294967264 }
  0x24   :  { %52 = sfence }
  0x25   :  { %s53_s28 = sld [smem:[#allocation2]]  ;;  %s1186_s29 = sld [smem:[#allocation2 + $0x1]]  ;;  %v1626_v0 = vld [vmem:[%s2731_s3] sm:$0xff]  ;;  %v1631_v1 = vld [vmem:[%s2731_s3 + $0x8] sm:$0xff]  ;;  %v1640_v2 = vld [vmem:[%s2731_s3 + $0x10] sm:$0xff]  ;;  %vm1150_vm0 = vcmask 15360  }
  0x26   :  { %s1611_s30 = sld [smem:[#allocation2 + $0x2]]  ;;  %s1613_s2 = sld [smem:[#allocation2 + $0x3]]  ;;  %v1645_v3 = vld [vmem:[%s2731_s3 + $0x18] sm:$0xff]  ;;  %v1650_v4 = vld [vmem:[%s2731_s3 + $0x20] sm:$0xff]  ;;  %v1655_v5 = vld [vmem:[%s2731_s3 + $0x28] sm:$0xff] }
  0x27   :  { %s1615_s5 = sld [smem:[#allocation2 + $0x4]]  ;;  %s1617_s6 = sld [smem:[#allocation2 + $0x5]]  ;;  %v1660_v8 = vld [vmem:[%s2731_s3 + $0x30] sm:$0xff]  ;;  %v1665_v9 = vld [vmem:[%s2731_s3 + $0x38] sm:$0xff] }
  0x28   :  { %s1619_s7 = sld [smem:[#allocation2 + $0x6]]  ;;  %s1621_s8 = sld [smem:[#allocation2 + $0x7]] }
  0x29   :  { %s1633_s13 = sld [smem:[#allocation2 + $0x8]]  ;;  %s1635_s14 = sld [smem:[#allocation2 + $0x9]] }
  0x2a   :  { %s1671_s25 = sld [smem:[#allocation2 + $0xa]]  ;;  %s1673_s26 = sld [smem:[#allocation2 + $0xb]] }
  0x2b   :  { %v256_v6 = vstv %s53_s28  ;;  %v259_v7 = vstv %s1186_s29  ;;  %s1684_s27 = sld [smem:[#allocation2 + $0xc]]  ;;  %s1686_s28 = sld [smem:[#allocation2 + $0xd]] }
  0x2c   :  { %v257_v10 = vmul.f32 %v256_v6, %v1626_v0  ;;  %v258_v11 = vmul.f32 %v256_v6, %v1631_v1  ;;  %v260_v12 = vmul.f32 %v1640_v2, %v259_v7  ;;  %v261_v13 = vmul.f32 %v1645_v3, %v259_v7  ;;  %s1695_s29 = sld [smem:[#allocation2 + $0xe]]  ;;  %s1730_s9 = sld [smem:[#allocation2 + $0x15]] }
  0x2d   :  { %v264_v14 = vstv %s1611_s30  ;;  %v269_v15 = vstv %s1613_s2  ;;  %v282_v16 = vstv %s1615_s5  ;;  %v285_v17 = vstv %s1617_s6  ;;  %s1697_s30 = sld [smem:[#allocation2 + $0xf]]  ;;  %s1705_s2 = sld [smem:[#allocation2 + $0x10]] }
  0x2e   :  { %v262_v18 = vadd.f32 %v260_v12, %v257_v10  ;;  %v263_v19 = vadd.f32 %v261_v13, %v258_v11  ;;  %v265_v20 = vmul.f32 %v1650_v4, %v264_v14  ;;  %v266_v21 = vmul.f32 %v1655_v5, %v264_v14  ;;  %s1707_s5 = sld [smem:[#allocation2 + $0x11]]  ;;  %s1715_s6 = sld [smem:[#allocation2 + $0x12]] }
  0x2f   :  { %v270_v22 = vmul.f32 %v1660_v8, %v269_v15  ;;  %v283_v23 = vmul.f32 %v282_v16, %v1626_v0  ;;  %v284_v24 = vmul.f32 %v282_v16, %v1631_v1  ;;  %v271_v26 = vmul.f32 %v1665_v9, %v269_v15  ;;  %s1735_s10 = sld [smem:[#allocation2 + $0x16]]  ;;  %s1737_s11 = sld [smem:[#allocation2 + $0x17]] }
  0x30   :  { %v267_v25 = vadd.f32 %v265_v20, %v262_v18  ;;  %v286_v27 = vmul.f32 %v1640_v2, %v285_v17  ;;  %v287_v28 = vmul.f32 %v1645_v3, %v285_v17  ;;  %v290_v29 = vstv %s1619_s7  ;;  %s1717_s7 = sld [smem:[#allocation2 + $0x13]]  ;;  %s1753_s12 = sld [smem:[#allocation2 + $0x18]] }
  0x31   :  { %v295_v30 = vstv %s1621_s8  ;;  %v310_v31 = vstv %s1633_s13  ;;  %v313_v32 = vstv %s1635_s14  ;;  %v268_v33 = vadd.f32 %v266_v21, %v263_v19  ;;  %s1728_s8 = sld [smem:[#allocation2 + $0x14]]  ;;  %s1755_s13 = sld [smem:[#allocation2 + $0x19]] }
  0x32   :  { %v1699_v34 = vadd.f32 %v270_v22, %v267_v25  ;;  %v288_v35 = vadd.f32 %v286_v27, %v283_v23  ;;  %v289_v36 = vadd.f32 %v287_v28, %v284_v24  ;;  %v291_v37 = vmul.f32 %v1650_v4, %v290_v29  ;;  %s1763_s14 = sld [smem:[#allocation2 + $0x1a]]  ;;  %s1765_s15 = sld [smem:[#allocation2 + $0x1b]] }
  0x33   :  { %v292_v38 = vmul.f32 %v1655_v5, %v290_v29  ;;  %v296_v39 = vmul.f32 %v1660_v8, %v295_v30  ;;  %v297_v40 = vmul.f32 %v1665_v9, %v295_v30  ;;  %v311_v41 = vmul.f32 %v310_v31, %v1626_v0  ;;  %s1780_s16 = sld [smem:[#allocation2 + $0x1c]]  ;;  %s1782_s17 = sld [smem:[#allocation2 + $0x1d]] }
  0x34   :  { %v312_v42 = vmul.f32 %v310_v31, %v1631_v1  ;;  %v314_v43 = vmul.f32 %v1640_v2, %v313_v32  ;;  %v315_v44 = vmul.f32 %v1645_v3, %v313_v32  ;;  %v293_v45 = vadd.f32 %v291_v37, %v288_v35  ;;  %s1791_s18 = sld [smem:[#allocation2 + $0x1e]]  ;;  %s1793_s19 = sld [smem:[#allocation2 + $0x1f]] }
  0x35   :  { %v294_v46 = vadd.f32 %v292_v38, %v289_v36  ;;  %v318_v47 = vstv %s1671_s25  ;;  %v323_v48 = vstv %s1673_s26  ;;  %v1721_v53 = vadd.f32 %v271_v26, %v268_v33  ;;  %s1801_s20 = sld [smem:[#allocation2 + $0x20]]  ;;  %s1803_s21 = sld [smem:[#allocation2 + $0x21]] }
  0x36   :  { %v316_v49 = vadd.f32 %v314_v43, %v311_v41  ;;  %v317_v50 = vadd.f32 %v315_v44, %v312_v42  ;;  %v319_v51 = vmul.f32 %v1650_v4, %v318_v47  ;;  %v320_v52 = vmul.f32 %v1655_v5, %v318_v47  ;;  %s1811_s22 = sld [smem:[#allocation2 + $0x22]]  ;;  %s1813_s23 = sld [smem:[#allocation2 + $0x23]] }
  0x37   :  { %v1723_v54 = vadd.f32 %v296_v39, %v293_v45  ;;  %v1725_v55 = vadd.f32 %v297_v40, %v294_v46  ;;  %v324_v56 = vmul.f32 %v1660_v8, %v323_v48  ;;  %v325_v58 = vmul.f32 %v1665_v9, %v323_v48  ;;  %s1824_s1 = sld [smem:[#allocation2 + $0x24]]  ;;  %s1826_s0 = sld [smem:[#allocation2 + $0x25]] }
  0x38   :  { %v321_v57 = vadd.f32 %v319_v51, %v316_v49  ;;  %v338_v59 = vstv %s1684_s27  ;;  %v341_v60 = vstv %s1686_s28  ;;  %v322_v7 = vadd.f32 %v320_v52, %v317_v50  ;;  %s1831_s24 = sld [smem:[#allocation2 + $0x26]]  ;;  %s1833_s25 = sld [smem:[#allocation2 + $0x27]] }
  0x39   :  { %v339_v61 = vmul.f32 %v338_v59, %v1626_v0  ;;  %v340_v62 = vmul.f32 %v338_v59, %v1631_v1  ;;  %v342_v63 = vmul.f32 %v1640_v2, %v341_v60  ;;  %v343_v6 = vmul.f32 %v1645_v3, %v341_v60  ;;  %s1849_s26 = sld [smem:[#allocation2 + $0x28]]  ;;  %s1851_s27 = sld [smem:[#allocation2 + $0x29]] }
  0x3a   :  { %v1743_v10 = vadd.f32 %v324_v56, %v321_v57  ;;  %v346_v11 = vstv %s1695_s29  ;;  %v351_v12 = vstv %s1697_s30  ;;  %v366_v19 = vstv %s1705_s2  ;;  %s1859_s28 = sld [smem:[#allocation2 + $0x2a]]  ;;  %s1861_s29 = sld [smem:[#allocation2 + $0x2b]] }
  0x3b   :  { %v344_v13 = vadd.f32 %v342_v63, %v339_v61  ;;  %v345_v14 = vadd.f32 %v343_v6, %v340_v62  ;;  %v347_v15 = vmul.f32 %v1650_v4, %v346_v11  ;;  %v348_v16 = vmul.f32 %v1655_v5, %v346_v11  ;;  %s1876_s30 = sld [smem:[#allocation2 + $0x2c]]  ;;  %s1878_s2 = sld [smem:[#allocation2 + $0x2d]] }
  0x3c   :  { %v352_v17 = vmul.f32 %v1660_v8, %v351_v12  ;;  %v353_v18 = vmul.f32 %v1665_v9, %v351_v12  ;;  %v369_v20 = vstv %s1707_s5  ;;  %v367_v23 = vmul.f32 %v366_v19, %v1626_v0  ;;  %s1887_s5 = sld [smem:[#allocation2 + $0x2e]] }
  0x3d   :  { %v349_v21 = vadd.f32 %v347_v15, %v344_v13  ;;  %v350_v22 = vadd.f32 %v348_v16, %v345_v14  ;;  %v368_v24 = vmul.f32 %v366_v19, %v1631_v1  ;;  %v370_v25 = vmul.f32 %v1640_v2, %v369_v20 }
  0x3e   :  { %v371_v26 = vmul.f32 %v1645_v3, %v369_v20  ;;  %v374_v27 = vstv %s1715_s6  ;;  %v379_v28 = vstv %s1717_s7  ;;  %v1767_v29 = vadd.f32 %v325_v58, %v322_v7  ;;  %s1889_s6 = sld [smem:[#allocation2 + $0x2f]]  ;;  %s1897_s7 = sld [smem:[#allocation2 + $0x30]] }
  0x3f   :  { %v1769_v30 = vadd.f32 %v352_v17, %v349_v21  ;;  %v1771_v31 = vadd.f32 %v353_v18, %v350_v22  ;;  %v375_v32 = vmul.f32 %v1650_v4, %v374_v27  ;;  %v372_v33 = vadd.f32 %v370_v25, %v367_v23 }
  0x40   :  { %v373_v35 = vadd.f32 %v371_v26, %v368_v24  ;;  %v376_v36 = vmul.f32 %v1655_v5, %v374_v27  ;;  %v380_v37 = vmul.f32 %v1660_v8, %v379_v28  ;;  %v394_v38 = vstv %s1728_s8  ;;  %s1899_s8 = sld [smem:[#allocation2 + $0x31]] }
  0x41   :  { %v397_v39 = vstv %s1730_s9  ;;  %v402_v40 = vstv %s1735_s10  ;;  %v407_v41 = vstv %s1737_s11  ;;  %v377_v42 = vadd.f32 %v375_v32, %v372_v33  ;;  %s1907_s9 = sld [smem:[#allocation2 + $0x32]]  ;;  %s1909_s10 = sld [smem:[#allocation2 + $0x33]] }
  0x42   :  { %v381_v43 = vmul.f32 %v1665_v9, %v379_v28  ;;  %v395_v44 = vmul.f32 %v394_v38, %v1626_v0  ;;  %v396_v45 = vmul.f32 %v394_v38, %v1631_v1  ;;  %v398_v46 = vmul.f32 %v1640_v2, %v397_v39  ;;  %s1919_s11 = sld [smem:[#allocation2 + $0x34]] }
  0x43   :  { %v399_v47 = vmul.f32 %v1645_v3, %v397_v39  ;;  %v403_v48 = vmul.f32 %v1650_v4, %v402_v40  ;;  %v404_v49 = vmul.f32 %v1655_v5, %v402_v40  ;;  %v378_v50 = vadd.f32 %v376_v36, %v373_v35 }
  0x44   :  { %v1795_v51 = vadd.f32 %v380_v37, %v377_v42  ;;  %v408_v52 = vmul.f32 %v1660_v8, %v407_v41  ;;  %v409_v56 = vmul.f32 %v1665_v9, %v407_v41  ;;  %v400_v57 = vadd.f32 %v398_v46, %v395_v44 }
  0x45   :  { %v401_v58 = vadd.f32 %v399_v47, %v396_v45  ;;  %v422_v59 = vstv %s1753_s12  ;;  %v425_v60 = vstv %s1755_s13  ;;  %v430_v12 = vstv %s1763_s14  ;;  %s1921_s12 = sld [smem:[#allocation2 + $0x35]]  ;;  %s1925_s13 = sld [smem:[#allocation2 + $0x36]] }
  0x46   :  { %v423_v61 = vmul.f32 %v422_v59, %v1626_v0  ;;  %v424_v62 = vmul.f32 %v422_v59, %v1631_v1  ;;  %v426_v63 = vmul.f32 %v1640_v2, %v425_v60  ;;  %v427_v6 = vmul.f32 %v1645_v3, %v425_v60  ;;  %s1927_s14 = sld [smem:[#allocation2 + $0x37]] }
  0x47   :  { %v405_v7 = vadd.f32 %v403_v48, %v400_v57  ;;  %v406_v11 = vadd.f32 %v404_v49, %v401_v58  ;;  %v435_v13 = vstv %s1765_s15  ;;  %v431_v16 = vmul.f32 %v1650_v4, %v430_v12  ;;  %s1946_s15 = sld [smem:[#allocation2 + $0x38]] }
  0x48   :  { %v428_v14 = vadd.f32 %v426_v63, %v423_v61  ;;  %v429_v15 = vadd.f32 %v427_v6, %v424_v62  ;;  %v432_v17 = vmul.f32 %v1655_v5, %v430_v12  ;;  %v1817_v18 = vadd.f32 %v381_v43, %v378_v50 }
  0x49   :  { %v1819_v19 = vadd.f32 %v408_v52, %v405_v7  ;;  %v1821_v20 = vadd.f32 %v409_v56, %v406_v11  ;;  %v436_v21 = vmul.f32 %v1660_v8, %v435_v13  ;;  %v437_v23 = vmul.f32 %v1665_v9, %v435_v13 }
  0x4a   :  { %v433_v22 = vadd.f32 %v431_v16, %v428_v14  ;;  %v450_v24 = vstv %s1780_s16  ;;  %v453_v25 = vstv %s1782_s17  ;;  %v434_v33 = vadd.f32 %v432_v17, %v429_v15  ;;  %s1948_s16 = sld [smem:[#allocation2 + $0x39]]  ;;  %s1963_s17 = sld [smem:[#allocation4]] }
  0x4b   :  { %v451_v26 = vmul.f32 %v450_v24, %v1626_v0  ;;  %v452_v27 = vmul.f32 %v450_v24, %v1631_v1  ;;  %v454_v28 = vmul.f32 %v1640_v2, %v453_v25  ;;  %v455_v32 = vmul.f32 %v1645_v3, %v453_v25 }
  0x4c   :  { %v1839_v35 = vadd.f32 %v436_v21, %v433_v22  ;;  %v458_v36 = vstv %s1791_s18  ;;  %v463_v37 = vstv %s1793_s19  ;;  %v478_v44 = vstv %s1801_s20  ;;  %s1965_s18 = sld [smem:[#allocation4 + $0x1]]  ;;  %s1971_s19 = sld [smem:[#allocation4 + $0x2]] }
  0x4d   :  { %v456_v38 = vadd.f32 %v454_v28, %v451_v26  ;;  %v457_v39 = vadd.f32 %v455_v32, %v452_v27  ;;  %v459_v40 = vmul.f32 %v1650_v4, %v458_v36  ;;  %v460_v41 = vmul.f32 %v1655_v5, %v458_v36  ;;  %s1973_s20 = sld [smem:[#allocation4 + $0x3]] }
  0x4e   :  { %v464_v42 = vmul.f32 %v1660_v8, %v463_v37  ;;  %v465_v43 = vmul.f32 %v1665_v9, %v463_v37  ;;  %v481_v45 = vstv %s1803_s21  ;;  %v479_v48 = vmul.f32 %v478_v44, %v1626_v0  ;;  %s1977_s21 = sld [smem:[#allocation4 + $0x4]] }
  0x4f   :  { %v461_v46 = vadd.f32 %v459_v40, %v456_v38  ;;  %v462_v47 = vadd.f32 %v460_v41, %v457_v39  ;;  %v480_v49 = vmul.f32 %v478_v44, %v1631_v1  ;;  %v482_v50 = vmul.f32 %v1640_v2, %v481_v45 }
  0x50   :  { %v483_v52 = vmul.f32 %v1645_v3, %v481_v45  ;;  %v486_v56 = vstv %s1811_s22  ;;  %v491_v57 = vstv %s1813_s23  ;;  %v1863_v58 = vadd.f32 %v437_v23, %v434_v33  ;;  %s1979_s22 = sld [smem:[#allocation4 + $0x5]]  ;;  %s1986_s23 = sld [smem:[#allocation4 + $0x6]] }
  0x51   :  { %v1865_v59 = vadd.f32 %v464_v42, %v461_v46  ;;  %v1867_v60 = vadd.f32 %v465_v43, %v462_v47  ;;  %v487_v61 = vmul.f32 %v1650_v4, %v486_v56  ;;  %v484_v62 = vadd.f32 %v482_v50, %v479_v48 }
  0x52   :  { %v485_v63 = vadd.f32 %v483_v52, %v480_v49  ;;  %v488_v6 = vmul.f32 %v1655_v5, %v486_v56  ;;  %v492_v7 = vmul.f32 %v1660_v8, %v491_v57  ;;  %v506_v11 = vstv %s1824_s1  ;;  %s1996_s1 = sld [smem:[#allocation4 + $0x7]] }
  0x53   :  { %v509_v12 = vstv %s1826_s0  ;;  %v514_v13 = vstv %s1831_s24  ;;  %v519_v14 = vstv %s1833_s25  ;;  %v489_v15 = vadd.f32 %v487_v61, %v484_v62  ;;  %s2003_s0 = sld [smem:[#allocation4 + $0x8]]  ;;  %s2014_s24 = sld [smem:[#allocation4 + $0x9]] }
  0x54   :  { %v493_v16 = vmul.f32 %v1665_v9, %v491_v57  ;;  %v507_v17 = vmul.f32 %v506_v11, %v1626_v0  ;;  %v508_v21 = vmul.f32 %v506_v11, %v1631_v1  ;;  %v510_v22 = vmul.f32 %v1640_v2, %v509_v12  ;;  %s2021_s25 = sld [smem:[#allocation4 + $0xa]] }
  0x55   :  { %v511_v23 = vmul.f32 %v1645_v3, %v509_v12  ;;  %v515_v24 = vmul.f32 %v1650_v4, %v514_v13  ;;  %v516_v25 = vmul.f32 %v1655_v5, %v514_v13  ;;  %v490_v26 = vadd.f32 %v488_v6, %v485_v63 }
  0x56   :  { %v1891_v27 = vadd.f32 %v492_v7, %v489_v15  ;;  %v520_v28 = vmul.f32 %v1660_v8, %v519_v14  ;;  %v521_v32 = vmul.f32 %v1665_v9, %v519_v14  ;;  %v512_v33 = vadd.f32 %v510_v22, %v507_v17 }
  0x57   :  { %v513_v36 = vadd.f32 %v511_v23, %v508_v21  ;;  %v534_v37 = vstv %s1849_s26  ;;  %v537_v38 = vstv %s1851_s27  ;;  %v542_v45 = vstv %s1859_s28  ;;  %s2027_s26 = sld [smem:[#allocation4 + $0xb]]  ;;  %s2033_s27 = sld [smem:[#allocation4 + $0xc]] }
  0x58   :  { %v535_v39 = vmul.f32 %v534_v37, %v1626_v0  ;;  %v536_v40 = vmul.f32 %v534_v37, %v1631_v1  ;;  %v538_v41 = vmul.f32 %v1640_v2, %v537_v38  ;;  %v539_v42 = vmul.f32 %v1645_v3, %v537_v38  ;;  %s2040_s28 = sld [smem:[#allocation4 + $0xd]] }
  0x59   :  { %v517_v43 = vadd.f32 %v515_v24, %v512_v33  ;;  %v518_v44 = vadd.f32 %v516_v25, %v513_v36  ;;  %v547_v46 = vstv %s1861_s29  ;;  %v543_v49 = vmul.f32 %v1650_v4, %v542_v45  ;;  %s2045_s29 = sld [smem:[#allocation2 + $0x3a]] }
  0x5a   :  { %v540_v47 = vadd.f32 %v538_v41, %v535_v39  ;;  %v541_v48 = vadd.f32 %v539_v42, %v536_v40  ;;  %v544_v50 = vmul.f32 %v1655_v5, %v542_v45  ;;  %v1913_v52 = vadd.f32 %v493_v16, %v490_v26 }
  0x5b   :  { %v1915_v56 = vadd.f32 %v520_v28, %v517_v43  ;;  %v548_v57 = vmul.f32 %v1660_v8, %v547_v46  ;;  %v549_v61 = vmul.f32 %v1665_v9, %v547_v46  ;;  %v562_v6 = vstv %s1876_s30  ;;  %s2062_s30 = sld [smem:[#allocation2 + $0x3b]] }
  0x5c   :  { %v545_v62 = vadd.f32 %v543_v49, %v540_v47  ;;  %v546_v63 = vadd.f32 %v544_v50, %v541_v48  ;;  %v565_v7 = vstv %s1878_s2  ;;  %v563_v11 = vmul.f32 %v562_v6, %v1626_v0  ;;  %s2071_s2 = sld [smem:[#allocation6]] }
  0x5d   :  { %v564_v12 = vmul.f32 %v562_v6, %v1631_v1  ;;  %v566_v13 = vmul.f32 %v1640_v2, %v565_v7  ;;  %v567_v14 = vmul.f32 %v1645_v3, %v565_v7  ;;  %v1933_v15 = vadd.f32 %v521_v32, %v518_v44 }
  0x5e   :  { %v1935_v16 = vadd.f32 %v548_v57, %v545_v62  ;;  %v570_v17 = vstv %s1887_s5  ;;  %v575_v21 = vstv %s1889_s6  ;;  %v1941_v26 = vadd.f32 %v549_v61, %v546_v63  ;;  %s2073_s5 = sld [smem:[#allocation6 + $0x1]]  ;;  %s2082_s6 = sld [smem:[#allocation6 + $0x2]] }
  0x5f   :  { %v568_v22 = vadd.f32 %v566_v13, %v563_v11  ;;  %v569_v23 = vadd.f32 %v567_v14, %v564_v12  ;;  %v571_v24 = vmul.f32 %v1650_v4, %v570_v17  ;;  %v572_v25 = vmul.f32 %v1655_v5, %v570_v17 }
  0x60   :  { %v576_v28 = vmul.f32 %v1660_v8, %v575_v21  ;;  %v590_v33 = vstv %s1897_s7  ;;  %v593_v36 = vstv %s1899_s8  ;;  %v577_v37 = vmul.f32 %v1665_v9, %v575_v21  ;;  %s2084_s7 = sld [smem:[#allocation6 + $0x3]]  ;;  %s2093_s8 = sld [smem:[#allocation6 + $0x4]] }
  0x61   :  { %v573_v32 = vadd.f32 %v571_v24, %v568_v22  ;;  %v591_v38 = vmul.f32 %v590_v33, %v1626_v0  ;;  %v592_v39 = vmul.f32 %v590_v33, %v1631_v1  ;;  %v594_v40 = vmul.f32 %v1640_v2, %v593_v36 }
  0x62   :  { %v595_v41 = vmul.f32 %v1645_v3, %v593_v36  ;;  %v598_v42 = vstv %s1907_s9  ;;  %v603_v43 = vstv %s1909_s10  ;;  %v574_v44 = vadd.f32 %v572_v25, %v569_v23  ;;  %s2095_s9 = sld [smem:[#allocation6 + $0x5]]  ;;  %s2104_s10 = sld [smem:[#allocation6 + $0x6]] }
  0x63   :  { %v1957_v45 = vadd.f32 %v576_v28, %v573_v32  ;;  %v599_v46 = vmul.f32 %v1650_v4, %v598_v42  ;;  %v600_v47 = vmul.f32 %v1655_v5, %v598_v42  ;;  %v596_v48 = vadd.f32 %v594_v40, %v591_v38 }
  0x64   :  { %v597_v49 = vadd.f32 %v595_v41, %v592_v39  ;;  %v604_v50 = vmul.f32 %v1660_v8, %v603_v43  ;;  %v605_v57 = vmul.f32 %v1665_v9, %v603_v43  ;;  %v618_v61 = vstv %s1919_s11  ;;  %s2111_s11 = sld [smem:[#allocation6 + $0x7]] }
  0x65   :  { %v621_v62 = vstv %s1921_s12  ;;  %v626_v63 = vstv %s1925_s13  ;;  %v631_v6 = vstv %s1927_s14  ;;  %v601_v7 = vadd.f32 %v599_v46, %v596_v48  ;;  %s2113_s12 = sld [smem:[#allocation6 + $0x8]]  ;;  %s2131_s13 = sld [smem:[#allocation6 + $0x9]] }
  0x66   :  { %v602_v11 = vadd.f32 %v600_v47, %v597_v49  ;;  %v619_v12 = vmul.f32 %v618_v61, %v1626_v0  ;;  %v620_v13 = vmul.f32 %v618_v61, %v1631_v1  ;;  %v1981_v14 = vadd.f32 %v577_v37, %v574_v44  ;;  %s2133_s14 = sld [smem:[#allocation6 + $0xa]] }
  0x67   :  { %v622_v17 = vmul.f32 %v1640_v2, %v621_v62  ;;  %v623_v21 = vmul.f32 %v1645_v3, %v621_v62  ;;  %v627_v22 = vmul.f32 %v1650_v4, %v626_v63  ;;  %v1988_v23 = vadd.f32 %v604_v50, %v601_v7 }
  0x68   :  { %v1990_v24 = vadd.f32 %v605_v57, %v602_v11  ;;  %v628_v25 = vmul.f32 %v1655_v5, %v626_v63  ;;  %v1994_v28 = vmul.f32 %v1660_v8, %v631_v6  ;;  %v1999_v36 = vmul.f32 %v1665_v9, %v631_v6 }
  0x69   :  { %v624_v33 = vadd.f32 %v622_v17, %v619_v12  ;;  %v646_v32 = vstv %s1946_s15  ;;  %v649_v37 = vstv %s1948_s16  ;;  %v625_v38 = vadd.f32 %v623_v21, %v620_v13  ;;  %s2140_s15 = sld [smem:[#allocation6 + $0xb]]  ;;  %s2142_s16 = sld [smem:[#allocation6 + $0xc]] }
  0x6a   :  { %v2006_v39 = vmul.f32 %v646_v32, %v1626_v0  ;;  %v2009_v40 = vmul.f32 %v646_v32, %v1631_v1  ;;  %v2012_v41 = vmul.f32 %v1640_v2, %v649_v37  ;;  %v274_v42 = vstv %s1963_s17  ;;  %s2151_s17 = sld [smem:[#allocation6 + $0xd]] }
  0x6b   :  { %v300_v43 = vstv %s1965_s18  ;;  %v629_v44 = vadd.f32 %v627_v22, %v624_v33  ;;  %v2019_v46 = vmul.f32 %v1645_v3, %v649_v37  ;;  %v275_v47 = vadd.f32 %v274_v42, %v1699_v34  ;;  %s2154_s18 = sld [smem:[#allocation4 + $0xe]] }
  0x6c   :  { %v276_v48 = vadd.f32 %v274_v42, %v1721_v53  ;;  %v301_v49 = vadd.f32 %v300_v43, %v1723_v54  ;;  %v302_v50 = vadd.f32 %v300_v43, %v1725_v55  ;;  %v328_v2 = vstv %s1971_s19  ;;  %s2159_s19 = sld [smem:[#allocation2 + $0x3c]] }
  0x6d   :  { %v356_v57 = vstv %s1973_s20  ;;  %v384_v61 = vstv %s1977_s21  ;;  %v412_v62 = vstv %s1979_s22  ;;  %1384 = vtanh.f32 %v275_v47  ;;  %s2169_s20 = sld [smem:[#allocation2 + $0x3d]]  ;;  %s2178_s21 = sld [smem:[#allocation2 + $0x3e]] }
  0x6e   :  { %v329_v3 = vadd.f32 %v328_v2, %v1743_v10  ;;  %v330_v34 = vadd.f32 %v328_v2, %v1767_v29  ;;  %v630_v53 = vadd.f32 %v628_v25, %v625_v38  ;;  %1386 = vtanh.f32 %v276_v48  ;;  %s2180_s22 = sld [smem:[#allocation2 + $0x3f]] }
  0x6f   :  { %v357_v54 = vadd.f32 %v356_v57, %v1769_v30  ;;  %v358_v55 = vadd.f32 %v356_v57, %v1771_v31  ;;  %v385_v63 = vadd.f32 %v384_v61, %v1795_v51  ;;  %1388 = vtanh.f32 %v301_v49 }
  0x70   :  { %v386_v6 = vadd.f32 %v384_v61, %v1817_v18  ;;  %v413_v10 = vadd.f32 %v412_v62, %v1819_v19  ;;  %v440_v7 = vstv %s1986_s23  ;;  %1390 = vtanh.f32 %v302_v50  ;;  %s2192_s23 = sld [smem:[#allocation4 + $0xf]] }
  0x71   :  { %v414_v29 = vadd.f32 %v412_v62, %v1821_v20  ;;  %v441_v30 = vadd.f32 %v440_v7, %v1839_v35  ;;  %v468_v31 = vstv %s1996_s1  ;;  %1392 = vtanh.f32 %v329_v3  ;;  %s2194_s1 = sld [smem:[#allocation6 + $0xe]] }
  0x72   :  { %v442_v51 = vadd.f32 %v440_v7, %v1863_v58  ;;  %v2052_v11 = vadd.f32 %v468_v31, %v1865_v59  ;;  %v496_v18 = vstv %s2003_s0  ;;  %1394 = vtanh.f32 %v330_v34  ;;  %s2200_s0 = sld [smem:[#allocation2 + $0x40]] }
  0x73   :  { %v2056_v19 = vadd.f32 %v468_v31, %v1867_v60  ;;  %v2059_v12 = vadd.f32 %v496_v18, %v1891_v27  ;;  %v524_v13 = vstv %s2014_s24  ;;  %1396 = vtanh.f32 %v357_v54  ;;  %s2202_s24 = sld [smem:[#allocation2 + $0x41]] }
  0x74   :  { %v2065_v20 = vadd.f32 %v496_v18, %v1913_v52  ;;  %v2068_v35 = vadd.f32 %v524_v13, %v1915_v56  ;;  %v552_v58 = vstv %s2021_s25  ;;  %1398 = vtanh.f32 %v358_v55  ;;  %s2319_s25 = sld [smem:[#allocation2 + $0x4b]] }
  0x75   :  { %v2076_v59 = vadd.f32 %v524_v13, %v1933_v15  ;;  %v2079_v60 = vadd.f32 %v552_v58, %v1935_v16  ;;  %v580_v27 = vstv %s2027_s26  ;;  %1400 = vtanh.f32 %v385_v63  ;;  %s2323_s26 = sld [smem:[#allocation2 + $0x4c]] }
  0x76   :  { %v2087_v52 = vadd.f32 %v552_v58, %v1941_v26  ;;  %v2090_v56 = vadd.f32 %v580_v27, %v1957_v45  ;;  %v608_v17 = vstv %s2033_s27  ;;  %1402 = vtanh.f32 %v386_v6  ;;  %s2327_s27 = sld [smem:[#allocation2 + $0x4d]] }
  0x77   :  { %v2098_v15 = vadd.f32 %v580_v27, %v1981_v14  ;;  %v2101_v16 = vadd.f32 %v608_v17, %v1988_v23  ;;  %v634_v21 = vadd.f32 %v1994_v28, %v629_v44  ;;  %v1385_v26 = vpop.eup %1384  ;;  %1404 = vtanh.f32 %v413_v10 }
  0x78   :  { %v2107_v45 = vadd.f32 %v608_v17, %v1990_v24  ;;  %v635_v22 = vadd.f32 %v1999_v36, %v630_v53  ;;  %v636_v25 = vstv %s2040_s28  ;;  %v1387_v33 = vpop.eup %1386  ;;  %1406 = vtanh.f32 %v414_v29  ;;  %s2329_s28 = sld [smem:[#allocation4 + $0x12]] }
  0x79   :  { %v2115_v14 = vadd.f32 %v636_v25, %v634_v21  ;;  %v2119_v23 = vadd.f32 %v2012_v41, %v2006_v39  ;;  %v654_v28 = vstv %s2045_s29  ;;  %v1389_v24 = vpop.eup %1388  ;;  %1408 = vtanh.f32 %v441_v30  ;;  %s2337_s29 = sld [smem:[#allocation2 + $0x4e]] }
  0x7a   :  { %v2122_v32 = vadd.f32 %v636_v25, %v635_v22  ;;  %v2126_v36 = vadd.f32 %v2019_v46, %v2009_v40  ;;  %v2129_v37 = vmul.f32 %v1650_v4, %v654_v28  ;;  %v1391_v38 = vpop.eup %1390  ;;  %v279_v39 = vstv %s2071_s2  ;;  %s2345_s2 = sld [smem:[#allocation6 + $0x11]] }
  0x7b   :  { %v305_v41 = vstv %s2073_s5  ;;  %1410 = vtanh.f32 %v442_v51  ;;  %v2138_v42 = vmul.f32 %v1655_v5, %v654_v28  ;;  %v1393_v40 = vpop.eup %1392  ;;  %v280_v43 = vmul.f32 %v1385_v26, %v279_v39  ;;  %s2351_s5 = sld [smem:[#allocation4 + $0x13]] }
  0x7c   :  { %v281_v44 = vmul.f32 %v1387_v33, %v279_v39  ;;  %v306_v4 = vmul.f32 %v1389_v24, %v305_v41  ;;  %v307_v46 = vmul.f32 %v1391_v38, %v305_v41  ;;  %v1395_v47 = vpop.eup %1394  ;;  %v333_v48 = vstv %s2082_s6  ;;  %s2238_s6 = sld [smem:[#allocation2 + $0x42]] }
  0x7d   :  { %v361_v49 = vstv %s2084_s7  ;;  %v389_v50 = vstv %s2093_s8  ;;  %v659_v2 = vstv %s2062_s30  ;;  %v1397_v57 = vpop.eup %1396  ;;  %v334_v62 = vmul.f32 %v1393_v40, %v333_v48  ;;  %s2240_s7 = sld [smem:[#allocation2 + $0x43]]  ;;  %s2339_s30 = sld [smem:[#allocation2 + $0x4f]] }
  0x7e   :  { %v308_v61 = vadd.f32 %v306_v4, %v280_v43  ;;  %v309_v5 = vadd.f32 %v307_v46, %v281_v44  ;;  %v335_v3 = vmul.f32 %v1395_v47, %v333_v48  ;;  %v1399_v34 = vpop.eup %1398  ;;  %v362_v53 = vmul.f32 %v1397_v57, %v361_v49  ;;  %s2363_s8 = sld [smem:[#allocation6 + $0x12]] }
  0x7f   :  { %v417_v54 = vstv %s2095_s9  ;;  %v445_v55 = vstv %s2104_s10  ;;  %1412 = vtanh.f32 %v2052_v11  ;;  %v1401_v63 = vpop.eup %1400  ;;  %v363_v7 = vmul.f32 %v1399_v34, %v361_v49  ;;  %s2368_s9 = sld [smem:[#allocation2 + $0x52]]  ;;  %s2370_s10 = sld [smem:[#allocation2 + $0x53]] }
  0x80   :  { %v336_v6 = vadd.f32 %v334_v62, %v308_v61  ;;  %v337_v10 = vadd.f32 %v335_v3, %v309_v5  ;;  %1414 = vtanh.f32 %v2056_v19  ;;  %v1403_v29 = vpop.eup %1402  ;;  %v390_v30 = vmul.f32 %v1401_v63, %v389_v50 }
  0x81   :  { %v473_v31 = vstv %s2111_s11  ;;  %1416 = vtanh.f32 %v2059_v12  ;;  %v501_v51 = vstv %s2113_s12  ;;  %v1405_v18 = vpop.eup %1404  ;;  %v391_v58 = vmul.f32 %v1403_v29, %v389_v50  ;;  %s2258_s12 = sld [smem:[#allocation4 + $0x10]]  ;;  %s2379_s11 = sld [smem:[#allocation4 + $0x14]] }
  0x82   :  { %v364_v11 = vadd.f32 %v362_v53, %v336_v6  ;;  %v365_v13 = vadd.f32 %v363_v7, %v337_v10  ;;  %1418 = vtanh.f32 %v2065_v20  ;;  %v1407_v19 = vpop.eup %1406  ;;  %v418_v27 = vmul.f32 %v1405_v18, %v417_v54 }
  0x83   :  { %1420 = vtanh.f32 %v2068_v35  ;;  %v529_v17 = vstv %s2131_s13  ;;  %v557_v21 = vstv %s2133_s14  ;;  %v1409_v26 = vpop.eup %1408  ;;  %v419_v25 = vmul.f32 %v1407_v19, %v417_v54  ;;  %v2215_v54 = vld [vmem:[%s2731_s3 + $0x18] sm:$0xff]  ;;  %s2264_s13 = sld [smem:[#allocation2 + $0x44]]  ;;  %s2266_s14 = sld [smem:[#allocation2 + $0x45]] }
  0x84   :  { %v392_v22 = vadd.f32 %v390_v30, %v364_v11  ;;  %v393_v12 = vadd.f32 %v391_v58, %v365_v13  ;;  %1422 = vtanh.f32 %v2076_v59  ;;  %v446_v28 = vmul.f32 %v1409_v26, %v445_v55  ;;  %v2235_v26 = vld [vmem:[%s2731_s3 + $0x28] sm:$0xff] }
  0x85   :  { %v1411_v33 = vpop.eup %1410  ;;  %1424 = vtanh.f32 %v2079_v60  ;;  %v585_v24 = vstv %s2140_s15  ;;  %v613_v38 = vstv %s2142_s16  ;;  %v657_v59 = vadd.f32 %v2129_v37, %v2119_v23  ;;  %s2274_s15 = sld [smem:[#allocation2 + $0x46]]  ;;  %s2276_s16 = sld [smem:[#allocation2 + $0x47]] }
  0x86   :  { %v420_v20 = vadd.f32 %v418_v27, %v392_v22  ;;  %v421_v39 = vadd.f32 %v419_v25, %v393_v12  ;;  %v447_v35 = vmul.f32 %v1411_v33, %v445_v55  ;;  %1426 = vtanh.f32 %v2087_v52  ;;  %v2229_v27 = vld [vmem:[%s2731_s3 + $0x20] sm:$0xff]  ;;  %v2247_v33 = vld [vmem:[%s2731_s3 + $0x30] sm:$0xff] }
  0x87   :  { %1428 = vtanh.f32 %v2090_v56  ;;  %v658_v41 = vadd.f32 %v2138_v42, %v2126_v36  ;;  %v660_v60 = vmul.f32 %v1660_v8, %v659_v2  ;;  %v641_v43 = vstv %s2151_s17  ;;  %s2409_s17 = sld [smem:[#allocation4 + $0x15]] }
  0x88   :  { %v448_v40 = vadd.f32 %v446_v28, %v420_v20  ;;  %1430 = vtanh.f32 %v2098_v15  ;;  %v661_v52 = vmul.f32 %v1665_v9, %v659_v2  ;;  %v449_v44 = vadd.f32 %v447_v35, %v421_v39  ;;  %v2253_v20 = vld [vmem:[%s2731_s3 + $0x38] sm:$0xff] }
  0x89   :  { %v1413_v56 = vpop.eup %1412  ;;  %1432 = vtanh.f32 %v2101_v16  ;;  %v662_v23 = vadd.f32 %v660_v60, %v657_v59  ;;  %v664_v37 = vstv %s2154_s18  ;;  %v674_v4 = vstv %s2159_s19  ;;  %s2403_s18 = sld [smem:[#allocation2 + $0x58]]  ;;  %s2407_s19 = sld [smem:[#allocation2 + $0x59]] }
  0x8a   :  { %v1415_v36 = vpop.eup %1414  ;;  %v474_v42 = vmul.f32 %v1413_v56, %v473_v31  ;;  %1434 = vtanh.f32 %v2107_v45  ;;  %v663_v8 = vadd.f32 %v661_v52, %v658_v41  ;;  %v675_v9 = vmul.f32 %v674_v4, %v1626_v0 }
  0x8b   :  { %v1417_v46 = vpop.eup %1416  ;;  %v475_v47 = vmul.f32 %v1415_v36, %v473_v31  ;;  %1436 = vtanh.f32 %v2115_v14  ;;  %v665_v15 = vadd.f32 %v664_v37, %v662_v23  ;;  %v676_v14 = vmul.f32 %v674_v4, %v1631_v1  ;;  %v2209_v1 = vld [vmem:[%s2731_s3 + $0x10] sm:$0xff] }
  0x8c   :  { %v1419_v48 = vpop.eup %1418  ;;  %v476_v49 = vadd.f32 %v474_v42, %v448_v40  ;;  %v502_v16 = vmul.f32 %v1417_v46, %v501_v51  ;;  %1438 = vtanh.f32 %v2122_v32  ;;  %v666_v50 = vadd.f32 %v664_v37, %v663_v8 }
  0x8d   :  { %v1421_v2 = vpop.eup %1420  ;;  %v477_v45 = vadd.f32 %v475_v47, %v449_v44  ;;  %v503_v57 = vmul.f32 %v1419_v48, %v501_v51  ;;  %1440 = vtanh.f32 %v665_v15  ;;  %v677_v32 = vstv %s2169_s20  ;;  %s2414_s20 = sld [smem:[#allocation6 + $0x14]] }
  0x8e   :  { %v1423_v61 = vpop.eup %1422  ;;  %v504_v0 = vadd.f32 %v502_v16, %v476_v49  ;;  %v530_v5 = vmul.f32 %v1421_v2, %v529_v17  ;;  %1442 = vtanh.f32 %v666_v50  ;;  %v678_v53 = vmul.f32 %v2209_v1, %v677_v32  ;;  %v2281_v2 = vld [vmem:[%s2731_s3] sm:$0xff] }
  0x8f   :  { %v1425_v62 = vpop.eup %1424  ;;  %v505_v3 = vadd.f32 %v503_v57, %v477_v45  ;;  %v531_v34 = vmul.f32 %v1423_v61, %v529_v17  ;;  %v679_v55 = vmul.f32 %v2215_v54, %v677_v32  ;;  %v682_v7 = vstv %s2178_s21  ;;  %s2292_s21 = sld [smem:[#allocation2 + $0x48]] }
  0x90   :  { %v1427_v63 = vpop.eup %1426  ;;  %v532_v6 = vadd.f32 %v530_v5, %v504_v0  ;;  %v558_v10 = vmul.f32 %v1425_v62, %v557_v21  ;;  %v687_v29 = vstv %s2180_s22  ;;  %v680_v18 = vadd.f32 %v678_v53, %v675_v9  ;;  %s2294_s22 = sld [smem:[#allocation6 + $0xf]] }
  0x91   :  { %v1429_v30 = vpop.eup %1428  ;;  %v533_v31 = vadd.f32 %v531_v34, %v505_v3  ;;  %v559_v51 = vmul.f32 %v1427_v63, %v557_v21  ;;  %v681_v11 = vadd.f32 %v679_v55, %v676_v14  ;;  %v683_v17 = vmul.f32 %v2229_v27, %v682_v7 }
  0x92   :  { %v1431_v13 = vpop.eup %1430  ;;  %v560_v58 = vadd.f32 %v558_v10, %v532_v6  ;;  %v586_v19 = vmul.f32 %v1429_v30, %v585_v24  ;;  %v684_v21 = vmul.f32 %v2235_v26, %v682_v7  ;;  %v688_v28 = vmul.f32 %v2247_v33, %v687_v29 }
  0x93   :  { %v1433_v22 = vpop.eup %1432  ;;  %v561_v12 = vadd.f32 %v559_v51, %v533_v31  ;;  %v587_v25 = vmul.f32 %v1431_v13, %v585_v24  ;;  %v689_v39 = vmul.f32 %v2253_v20, %v687_v29  ;;  %v685_v24 = vadd.f32 %v683_v17, %v680_v18 }
  0x94   :  { %v1435_v35 = vpop.eup %1434  ;;  %v588_v59 = vadd.f32 %v586_v19, %v560_v58  ;;  %v614_v41 = vmul.f32 %v1433_v22, %v613_v38  ;;  %v686_v60 = vadd.f32 %v684_v21, %v681_v11  ;;  %v669_v44 = vstv %s2194_s1  ;;  %s2300_s1 = sld [smem:[#allocation4 + $0x11]] }
  0x95   :  { %v1437_v40 = vpop.eup %1436  ;;  %v589_v52 = vadd.f32 %v587_v25, %v561_v12  ;;  %v615_v56 = vmul.f32 %v1435_v35, %v613_v38  ;;  %v692_v23 = vstv %s2192_s23  ;;  %v690_v8 = vadd.f32 %v688_v28, %v685_v24  ;;  %s2298_s23 = sld [smem:[#allocation2 + $0x49]] }
  0x96   :  { %v1439_v37 = vpop.eup %1438  ;;  %v616_v36 = vadd.f32 %v614_v41, %v588_v59  ;;  %v642_v42 = vmul.f32 %v1437_v40, %v641_v43  ;;  %v691_v4 = vadd.f32 %v689_v39, %v686_v60  ;;  %v702_v9 = vstv %s2200_s0  ;;  %s2304_s0 = sld [smem:[#allocation2 + $0x4a]] }
  0x97   :  { %v1441_v46 = vpop.eup %1440  ;;  %v617_v47 = vadd.f32 %v615_v56, %v589_v52  ;;  %v643_v15 = vmul.f32 %v1439_v37, %v641_v43  ;;  %v705_v48 = vstv %s2202_s24  ;;  %v693_v38 = vadd.f32 %v692_v23, %v690_v8  ;;  %v2287_v43 = vld [vmem:[%s2731_s3 + $0x8] sm:$0xff]  ;;  %s2311_s24 = sld [smem:[#allocation6 + $0x10]] }
  0x98   :  { %v1443_v49 = vpop.eup %1442  ;;  %v694_v16 = vadd.f32 %v692_v23, %v691_v4  ;;  %v644_v50 = vadd.f32 %v642_v42, %v616_v36  ;;  %v703_v45 = vmul.f32 %v2281_v2, %v702_v9  ;;  %v704_v57 = vmul.f32 %v2287_v43, %v702_v9 }
  0x99   :  { %v670_v14 = vmul.f32 %v1441_v46, %v669_v44  ;;  %1444 = vtanh.f32 %v693_v38  ;;  %v706_v61 = vmul.f32 %v2209_v1, %v705_v48  ;;  %v707_v0 = vmul.f32 %v2215_v54, %v705_v48 }
  0x9a   :  { %v645_v5 = vadd.f32 %v643_v15, %v617_v47  ;;  %1446 = vtanh.f32 %v694_v16  ;;  %v710_v32 = vstv %s2238_s6  ;;  %v715_v62 = vstv %s2240_s7  ;;  %s2354_s6 = sld [smem:[#allocation2 + $0x50]]  ;;  %s2358_s7 = sld [smem:[#allocation2 + $0x51]] }
  0x9b   :  { %v708_v3 = vadd.f32 %v706_v61, %v703_v45  ;;  %v709_v34 = vadd.f32 %v707_v0, %v704_v57  ;;  %v711_v53 = vmul.f32 %v2229_v27, %v710_v32  ;;  %v712_v55 = vmul.f32 %v2235_v26, %v710_v32 }
  0x9c   :  { %v671_v63 = vmul.f32 %v1443_v49, %v669_v44  ;;  %v716_v6 = vmul.f32 %v2247_v33, %v715_v62  ;;  %v717_v10 = vmul.f32 %v2253_v20, %v715_v62  ;;  %v720_v7 = vstv %s2258_s12  ;;  %s2383_s12 = sld [smem:[#allocation2 + $0x54]] }
  0x9d   :  { %v713_v29 = vadd.f32 %v711_v53, %v708_v3  ;;  %v714_v30 = vadd.f32 %v712_v55, %v709_v34  ;;  %v730_v31 = vstv %s2264_s13  ;;  %v733_v51 = vstv %s2266_s14  ;;  %s2385_s13 = sld [smem:[#allocation2 + $0x55]]  ;;  %s2389_s14 = sld [smem:[#allocation2 + $0x56]] }
  0x9e   :  { %v731_v18 = vmul.f32 %v2281_v2, %v730_v31  ;;  %v732_v11 = vmul.f32 %v2287_v43, %v730_v31  ;;  %v734_v13 = vmul.f32 %v2209_v1, %v733_v51  ;;  %v735_v58 = vmul.f32 %v2215_v54, %v733_v51 }
  0x9f   :  { %v718_v19 = vadd.f32 %v716_v6, %v713_v29  ;;  %v719_v17 = vadd.f32 %v717_v10, %v714_v30  ;;  %v738_v21 = vstv %s2274_s15  ;;  %v743_v22 = vstv %s2276_s16  ;;  %s2391_s15 = sld [smem:[#allocation6 + $0x13]]  ;;  %s2401_s16 = sld [smem:[#allocation2 + $0x57]] }
  0xa0   :  { %v736_v12 = vadd.f32 %v734_v13, %v731_v18  ;;  %v737_v25 = vadd.f32 %v735_v58, %v732_v11  ;;  %v739_v28 = vmul.f32 %v2229_v27, %v738_v21  ;;  %v740_v39 = vmul.f32 %v2235_v26, %v738_v21 }
  0xa1   :  { %v721_v35 = vadd.f32 %v720_v7, %v718_v19  ;;  %v722_v59 = vadd.f32 %v720_v7, %v719_v17  ;;  %v744_v41 = vmul.f32 %v2247_v33, %v743_v22  ;;  %v745_v24 = vmul.f32 %v2253_v20, %v743_v22 }
  0xa2   :  { %v2331_v60 = vadd.f32 %v670_v14, %v644_v50  ;;  %v697_v40 = vstv %s2294_s22  ;;  %v741_v52 = vadd.f32 %v739_v28, %v736_v12  ;;  %v742_v56 = vadd.f32 %v740_v39, %v737_v25  ;;  %s2427_s22 = sld [smem:[#allocation2 + $0x5b]] }
  0xa3   :  { %v1445_v44 = vpop.eup %1444  ;;  %1448 = vtanh.f32 %v721_v35  ;;  %v748_v23 = vstv %s2300_s1  ;;  %v758_v37 = vstv %s2292_s21  ;;  %v761_v36 = vstv %s2298_s23  ;;  %s2422_s21 = sld [smem:[#allocation2 + $0x5a]]  ;;  %s2430_s23 = sld [smem:[#allocation2 + $0x5c]] }
  0xa4   :  { %v1447_v42 = vpop.eup %1446  ;;  %1450 = vtanh.f32 %v722_v59  ;;  %v746_v8 = vadd.f32 %v744_v41, %v741_v52  ;;  %v747_v4 = vadd.f32 %v745_v24, %v742_v56  ;;  %v766_v46 = vstv %s2304_s0  ;;  %s2433_s1 = sld [smem:[#allocation2 + $0x5d]]  ;;  %s2435_s0 = sld [smem:[#allocation4 + $0x16]] }
  0xa5   :  { %v673_v47 = vadd.f32 %v671_v63, %v645_v5  ;;  %v759_v15 = vmul.f32 %v2281_v2, %v758_v37  ;;  %v760_v9 = vmul.f32 %v2287_v43, %v758_v37  ;;  %v762_v48 = vmul.f32 %v2209_v1, %v761_v36 }
  0xa6   :  { %v725_v49 = vstv %s2311_s24  ;;  %v749_v38 = vadd.f32 %v748_v23, %v746_v8  ;;  %v750_v16 = vadd.f32 %v748_v23, %v747_v4  ;;  %v763_v50 = vmul.f32 %v2215_v54, %v761_v36  ;;  %s2442_s24 = sld [smem:[#allocation2 + $0x5e]] }
  0xa7   :  { %v698_v45 = vmul.f32 %v1445_v44, %v697_v40  ;;  %v764_v57 = vadd.f32 %v762_v48, %v759_v15  ;;  %v767_v14 = vmul.f32 %v2229_v27, %v766_v46  ;;  %v768_v61 = vmul.f32 %v2235_v26, %v766_v46 }
  0xa8   :  { %v699_v0 = vmul.f32 %v1447_v42, %v697_v40  ;;  %1452 = vtanh.f32 %v749_v38  ;;  %v765_v5 = vadd.f32 %v763_v50, %v760_v9  ;;  %v771_v32 = vstv %s2319_s25  ;;  %s2444_s25 = sld [smem:[#allocation2 + $0x5f]] }
  0xa9   :  { %1454 = vtanh.f32 %v750_v16  ;;  %v769_v62 = vadd.f32 %v767_v14, %v764_v57  ;;  %v772_v3 = vmul.f32 %v2247_v33, %v771_v32  ;;  %v773_v34 = vmul.f32 %v2253_v20, %v771_v32 }
  0xaa   :  { %v770_v53 = vadd.f32 %v768_v61, %v765_v5  ;;  %v776_v55 = vstv %s2329_s28  ;;  %v786_v63 = vstv %s2323_s26  ;;  %v789_v6 = vstv %s2327_s27  ;;  %s2448_s26 = sld [smem:[#allocation6 + $0x15]]  ;;  %s2457_s27 = sld [smem:[#allocation2 + $0x60]] }
  0xab   :  { %v774_v10 = vadd.f32 %v772_v3, %v769_v62  ;;  %v787_v7 = vmul.f32 %v2281_v2, %v786_v63  ;;  %v788_v29 = vmul.f32 %v2287_v43, %v786_v63  ;;  %v790_v30 = vmul.f32 %v2209_v1, %v789_v6  ;;  %s2459_s28 = sld [smem:[#allocation4 + $0x17]] }
  0xac   :  { %v775_v31 = vadd.f32 %v773_v34, %v770_v53  ;;  %v791_v51 = vmul.f32 %v2215_v54, %v789_v6  ;;  %v794_v18 = vstv %s2337_s29  ;;  %v799_v11 = vstv %s2339_s30  ;;  %s2463_s29 = sld [smem:[#allocation2 + $0x61]]  ;;  %s2468_s30 = sld [smem:[#allocation2 + $0x62]] }
  0xad   :  { %v1449_v13 = vpop.eup %1448  ;;  %v777_v58 = vadd.f32 %v776_v55, %v774_v10  ;;  %v792_v19 = vadd.f32 %v790_v30, %v787_v7  ;;  %v795_v17 = vmul.f32 %v2229_v27, %v794_v18  ;;  %v796_v21 = vmul.f32 %v2235_v26, %v794_v18 }
  0xae   :  { %v1451_v22 = vpop.eup %1450  ;;  %v753_v12 = vstv %s2345_s2  ;;  %v778_v25 = vadd.f32 %v776_v55, %v775_v31  ;;  %v793_v28 = vadd.f32 %v791_v51, %v788_v29  ;;  %v800_v39 = vmul.f32 %v2247_v33, %v799_v11  ;;  %s2473_s2 = sld [smem:[#allocation2 + $0x63]] }
  0xaf   :  { %v700_v35 = vadd.f32 %v698_v45, %v2331_v60  ;;  %1456 = vtanh.f32 %v777_v58  ;;  %v797_v59 = vadd.f32 %v795_v17, %v792_v19  ;;  %v801_v41 = vmul.f32 %v2253_v20, %v799_v11 }
  0xb0   :  { %v726_v24 = vmul.f32 %v1449_v13, %v725_v49  ;;  %1458 = vtanh.f32 %v778_v25  ;;  %v798_v40 = vadd.f32 %v796_v21, %v793_v28  ;;  %v804_v52 = vstv %s2351_s5  ;;  %s2475_s5 = sld [smem:[#allocation6 + $0x16]] }
  0xb1   :  { %v701_v56 = vadd.f32 %v699_v0, %v673_v47  ;;  %v727_v44 = vmul.f32 %v1451_v22, %v725_v49  ;;  %v802_v23 = vadd.f32 %v800_v39, %v797_v59  ;;  %v814_v37 = vstv %s2354_s6  ;;  %s2483_s6 = sld [smem:[#allocation4 + $0x18]] }
  0xb2   :  { %v1453_v60 = vpop.eup %1452  ;;  %v803_v36 = vadd.f32 %v801_v41, %v798_v40  ;;  %v815_v42 = vmul.f32 %v2281_v2, %v814_v37  ;;  %v816_v8 = vmul.f32 %v2287_v43, %v814_v37  ;;  %v817_v4 = vstv %s2358_s7  ;;  %s2486_s7 = sld [smem:[#allocation2 + $0x64]] }
  0xb3   :  { %v1455_v46 = vpop.eup %1454  ;;  %v781_v15 = vstv %s2363_s8  ;;  %v805_v9 = vadd.f32 %v804_v52, %v802_v23  ;;  %v818_v47 = vmul.f32 %v2209_v1, %v817_v4  ;;  %v819_v48 = vmul.f32 %v2215_v54, %v817_v4  ;;  %s2488_s8 = sld [smem:[#allocation2 + $0x65]] }
  0xb4   :  { %v728_v49 = vadd.f32 %v726_v24, %v700_v35  ;;  %v806_v38 = vadd.f32 %v804_v52, %v803_v36  ;;  %v822_v16 = vstv %s2368_s9  ;;  %v827_v50 = vstv %s2370_s10  ;;  %s2493_s9 = sld [smem:[#allocation2 + $0x66]]  ;;  %s2495_s10 = sld [smem:[#allocation6 + $0x17]] }
  0xb5   :  { %v729_v45 = vadd.f32 %v727_v44, %v701_v56  ;;  %v754_v57 = vmul.f32 %v1453_v60, %v753_v12  ;;  %v820_v14 = vadd.f32 %v818_v47, %v815_v42  ;;  %v821_v61 = vadd.f32 %v819_v48, %v816_v8 }
  0xb6   :  { %v755_v0 = vmul.f32 %v1455_v46, %v753_v12  ;;  %1460 = vtanh.f32 %v805_v9  ;;  %v823_v5 = vmul.f32 %v2229_v27, %v822_v16  ;;  %v824_v32 = vmul.f32 %v2235_v26, %v822_v16 }
  0xb7   :  { %1462 = vtanh.f32 %v806_v38  ;;  %v828_v62 = vmul.f32 %v2247_v33, %v827_v50  ;;  %v829_v3 = vmul.f32 %v2253_v20, %v827_v50  ;;  %v832_v34 = vstv %s2379_s11  ;;  %s2505_s11 = sld [smem:[#allocation2 + $0x67]] }
  0xb8   :  { %v825_v53 = vadd.f32 %v823_v5, %v820_v14  ;;  %v826_v55 = vadd.f32 %v824_v32, %v821_v61  ;;  %v842_v63 = vstv %s2383_s12  ;;  %v845_v6 = vstv %s2385_s13  ;;  %s2507_s12 = sld [smem:[#allocation2 + $0x68]]  ;;  %s2511_s13 = sld [smem:[#allocation2 + $0x69]] }
  0xb9   :  { %v1457_v10 = vpop.eup %1456  ;;  %v843_v7 = vmul.f32 %v2281_v2, %v842_v63  ;;  %v844_v29 = vmul.f32 %v2287_v43, %v842_v63  ;;  %v846_v30 = vmul.f32 %v2209_v1, %v845_v6  ;;  %v847_v31 = vmul.f32 %v2215_v54, %v845_v6 }
  0xba   :  { %v1459_v51 = vpop.eup %1458  ;;  %v809_v18 = vstv %s2391_s15  ;;  %v830_v11 = vadd.f32 %v828_v62, %v825_v53  ;;  %v831_v13 = vadd.f32 %v829_v3, %v826_v55  ;;  %v850_v58 = vstv %s2389_s14  ;;  %s2513_s14 = sld [smem:[#allocation4 + $0x19]]  ;;  %s2520_s15 = sld [smem:[#allocation6 + $0x18]] }
  0xbb   :  { %v756_v19 = vadd.f32 %v754_v57, %v728_v49  ;;  %v848_v17 = vadd.f32 %v846_v30, %v843_v7  ;;  %v849_v21 = vadd.f32 %v847_v31, %v844_v29  ;;  %v851_v22 = vmul.f32 %v2229_v27, %v850_v58 }
  0xbc   :  { %v757_v12 = vadd.f32 %v755_v0, %v729_v45  ;;  %v833_v25 = vadd.f32 %v832_v34, %v830_v11  ;;  %v834_v28 = vadd.f32 %v832_v34, %v831_v13  ;;  %v852_v39 = vmul.f32 %v2235_v26, %v850_v58 }
  0xbd   :  { %v782_v35 = vmul.f32 %v1457_v10, %v781_v15  ;;  %v783_v59 = vmul.f32 %v1459_v51, %v781_v15  ;;  %v853_v41 = vadd.f32 %v851_v22, %v848_v17  ;;  %v855_v24 = vstv %s2401_s16  ;;  %s2526_s16 = sld [smem:[#allocation2 + $0x6a]] }
  0xbe   :  { %1464 = vtanh.f32 %v833_v25  ;;  %v854_v40 = vadd.f32 %v852_v39, %v849_v21  ;;  %v856_v52 = vmul.f32 %v2247_v33, %v855_v24  ;;  %v857_v56 = vmul.f32 %v2253_v20, %v855_v24 }
  0xbf   :  { %1466 = vtanh.f32 %v834_v28  ;;  %v860_v44 = vstv %s2409_s17  ;;  %v870_v23 = vstv %s2403_s18  ;;  %v873_v37 = vstv %s2407_s19  ;;  %s2531_s18 = sld [smem:[#allocation2 + $0x6b]]  ;;  %s2534_s19 = sld [smem:[#allocation4 + $0x1a]] }
  0xc0   :  { %v1461_v60 = vpop.eup %1460  ;;  %v837_v36 = vstv %s2414_s20  ;;  %v858_v42 = vadd.f32 %v856_v52, %v853_v41  ;;  %v859_v8 = vadd.f32 %v857_v56, %v854_v40  ;;  %v871_v4 = vmul.f32 %v2281_v2, %v870_v23  ;;  %s2537_s17 = sld [smem:[#allocation2 + $0x6c]]  ;;  %s2539_s20 = sld [smem:[#allocation2 + $0x6d]] }
  0xc1   :  { %v1463_v46 = vpop.eup %1462  ;;  %v784_v15 = vadd.f32 %v782_v35, %v756_v19  ;;  %v872_v9 = vmul.f32 %v2287_v43, %v870_v23  ;;  %v874_v47 = vmul.f32 %v2209_v1, %v873_v37  ;;  %v875_v48 = vmul.f32 %v2215_v54, %v873_v37 }
  0xc2   :  { %v785_v49 = vadd.f32 %v783_v59, %v757_v12  ;;  %v861_v38 = vadd.f32 %v860_v44, %v858_v42  ;;  %v862_v16 = vadd.f32 %v860_v44, %v859_v8  ;;  %v878_v50 = vstv %s2422_s21  ;;  %s2546_s21 = sld [smem:[#allocation2 + $0x6e]] }
  0xc3   :  { %v810_v45 = vmul.f32 %v1461_v60, %v809_v18  ;;  %v876_v57 = vadd.f32 %v874_v47, %v871_v4  ;;  %v877_v14 = vadd.f32 %v875_v48, %v872_v9  ;;  %v879_v61 = vmul.f32 %v2229_v27, %v878_v50 }
  0xc4   :  { %v811_v0 = vmul.f32 %v1463_v46, %v809_v18  ;;  %1468 = vtanh.f32 %v861_v38  ;;  %v880_v5 = vmul.f32 %v2235_v26, %v878_v50  ;;  %v883_v32 = vstv %s2427_s22  ;;  %s2548_s22 = sld [smem:[#allocation2 + $0x6f]] }
  0xc5   :  { %1470 = vtanh.f32 %v862_v16  ;;  %v881_v62 = vadd.f32 %v879_v61, %v876_v57  ;;  %v884_v3 = vmul.f32 %v2247_v33, %v883_v32  ;;  %v885_v34 = vmul.f32 %v2253_v20, %v883_v32 }
  0xc6   :  { %v882_v53 = vadd.f32 %v880_v5, %v877_v14  ;;  %v888_v55 = vstv %s2435_s0  ;;  %v898_v63 = vstv %s2430_s23  ;;  %v901_v6 = vstv %s2433_s1  ;;  %s2556_s23 = sld [smem:[#allocation6 + $0x19]]  ;;  %s2563_s1 = sld [smem:[#allocation2 + $0x70]] }
  0xc7   :  { %v886_v10 = vadd.f32 %v884_v3, %v881_v62  ;;  %v899_v7 = vmul.f32 %v2281_v2, %v898_v63  ;;  %v900_v29 = vmul.f32 %v2287_v43, %v898_v63  ;;  %v902_v30 = vmul.f32 %v2209_v1, %v901_v6  ;;  %s2568_s0 = sld [smem:[#allocation2 + $0x71]] }
  0xc8   :  { %v1465_v31 = vpop.eup %1464  ;;  %v887_v51 = vadd.f32 %v885_v34, %v882_v53  ;;  %v903_v18 = vmul.f32 %v2215_v54, %v901_v6  ;;  %v906_v11 = vstv %s2442_s24  ;;  %v911_v13 = vstv %s2444_s25  ;;  %s2572_s24 = sld [smem:[#allocation2 + $0x72]]  ;;  %s2574_s25 = sld [smem:[#allocation4 + $0x1b]] }
  0xc9   :  { %v1467_v58 = vpop.eup %1466  ;;  %v865_v19 = vstv %s2448_s26  ;;  %v889_v17 = vadd.f32 %v888_v55, %v886_v10  ;;  %v904_v21 = vadd.f32 %v902_v30, %v899_v7  ;;  %v907_v22 = vmul.f32 %v2229_v27, %v906_v11  ;;  %s2579_s26 = sld [smem:[#allocation2 + $0x73]] }
  0xca   :  { %v812_v12 = vadd.f32 %v810_v45, %v784_v15  ;;  %v890_v25 = vadd.f32 %v888_v55, %v887_v51  ;;  %v905_v28 = vadd.f32 %v903_v18, %v900_v29  ;;  %v908_v39 = vmul.f32 %v2235_v26, %v906_v11 }
  0xcb   :  { %v813_v35 = vadd.f32 %v811_v0, %v785_v49  ;;  %v838_v59 = vmul.f32 %v1465_v31, %v837_v36  ;;  %v909_v41 = vadd.f32 %v907_v22, %v904_v21  ;;  %v912_v24 = vmul.f32 %v2247_v33, %v911_v13 }
  0xcc   :  { %v839_v40 = vmul.f32 %v1467_v58, %v837_v36  ;;  %1472 = vtanh.f32 %v889_v17  ;;  %v910_v52 = vadd.f32 %v908_v39, %v905_v28  ;;  %v913_v56 = vmul.f32 %v2253_v20, %v911_v13 }
  0xcd   :  { %1474 = vtanh.f32 %v890_v25  ;;  %v914_v44 = vadd.f32 %v912_v24, %v909_v41  ;;  %v916_v23 = vstv %s2459_s28  ;;  %v926_v37 = vstv %s2457_s27  ;;  %s2581_s27 = sld [smem:[#allocation6 + $0x1a]]  ;;  %s2592_s28 = sld [smem:[#allocation2 + $0x74]] }
  0xce   :  { %v1469_v60 = vpop.eup %1468  ;;  %v915_v42 = vadd.f32 %v913_v56, %v910_v52  ;;  %v927_v8 = vmul.f32 %v2281_v2, %v926_v37  ;;  %v928_v36 = vmul.f32 %v2287_v43, %v926_v37  ;;  %v929_v4 = vstv %s2463_s29  ;;  %s2594_s29 = sld [smem:[#allocation2 + $0x75]] }
  0xcf   :  { %v1471_v46 = vpop.eup %1470  ;;  %v917_v15 = vadd.f32 %v916_v23, %v914_v44  ;;  %v930_v9 = vmul.f32 %v2209_v1, %v929_v4  ;;  %v931_v47 = vmul.f32 %v2215_v54, %v929_v4  ;;  %v840_v48 = vadd.f32 %v838_v59, %v812_v12 }
  0xd0   :  { %v893_v49 = vstv %s2475_s5  ;;  %v934_v38 = vstv %s2468_s30  ;;  %v939_v16 = vstv %s2473_s2  ;;  %v841_v50 = vadd.f32 %v839_v40, %v813_v35  ;;  %s2598_s30 = sld [smem:[#allocation2 + $0x76]]  ;;  %s2600_s2 = sld [smem:[#allocation4 + $0x1c]] }
  0xd1   :  { %v866_v45 = vmul.f32 %v1469_v60, %v865_v19  ;;  %v932_v57 = vadd.f32 %v930_v9, %v927_v8  ;;  %v933_v14 = vadd.f32 %v931_v47, %v928_v36  ;;  %v867_v61 = vmul.f32 %v1471_v46, %v865_v19  ;;  %s2605_s5 = sld [smem:[#allocation6 + $0x1b]] }
  0xd2   :  { %v918_v0 = vadd.f32 %v916_v23, %v915_v42  ;;  %v935_v5 = vmul.f32 %v2229_v27, %v934_v38  ;;  %v936_v32 = vmul.f32 %v2235_v26, %v934_v38  ;;  %1476 = vtanh.f32 %v917_v15 }
  0xd3   :  { %v940_v62 = vmul.f32 %v2247_v33, %v939_v16  ;;  %v941_v3 = vmul.f32 %v2253_v20, %v939_v16  ;;  %v944_v34 = vstv %s2483_s6  ;;  %v954_v63 = vstv %s2486_s7  ;;  %s2613_s6 = sld [smem:[#allocation2 + $0x77]]  ;;  %s2615_s7 = sld [smem:[#allocation2 + $0x78]] }
  0xd4   :  { %v937_v53 = vadd.f32 %v935_v5, %v932_v57  ;;  %v938_v55 = vadd.f32 %v936_v32, %v933_v14  ;;  %v957_v6 = vstv %s2488_s8  ;;  %v955_v10 = vmul.f32 %v2281_v2, %v954_v63  ;;  %s2617_s8 = sld [smem:[#allocation2 + $0x79]] }
  0xd5   :  { %v956_v7 = vmul.f32 %v2287_v43, %v954_v63  ;;  %v958_v29 = vmul.f32 %v2209_v1, %v957_v6  ;;  %v959_v30 = vmul.f32 %v2215_v54, %v957_v6  ;;  %v921_v51 = vstv %s2495_s10  ;;  %s2623_s10 = sld [smem:[#allocation6 + $0x1c]] }
  0xd6   :  { %v1473_v31 = vpop.eup %1472  ;;  %v942_v18 = vadd.f32 %v940_v62, %v937_v53  ;;  %v943_v11 = vadd.f32 %v941_v3, %v938_v55  ;;  %v962_v13 = vstv %s2493_s9  ;;  %1478 = vtanh.f32 %v918_v0  ;;  %s2621_s9 = sld [smem:[#allocation4 + $0x1d]] }
  0xd7   :  { %v1475_v58 = vpop.eup %1474  ;;  %v960_v19 = vadd.f32 %v958_v29, %v955_v10  ;;  %v961_v17 = vadd.f32 %v959_v30, %v956_v7  ;;  %v963_v21 = vmul.f32 %v2229_v27, %v962_v13  ;;  %v868_v22 = vadd.f32 %v866_v45, %v840_v48 }
  0xd8   :  { %v945_v12 = vadd.f32 %v944_v34, %v942_v18  ;;  %v946_v25 = vadd.f32 %v944_v34, %v943_v11  ;;  %v964_v28 = vmul.f32 %v2235_v26, %v962_v13  ;;  %v869_v39 = vadd.f32 %v867_v61, %v841_v50 }
  0xd9   :  { %v894_v35 = vmul.f32 %v1473_v31, %v893_v49  ;;  %v965_v59 = vadd.f32 %v963_v21, %v960_v19  ;;  %v967_v41 = vstv %s2505_s11  ;;  %v895_v24 = vmul.f32 %v1475_v58, %v893_v49  ;;  %s2633_s11 = sld [smem:[#allocation2 + $0x7a]] }
  0xda   :  { %v966_v40 = vadd.f32 %v964_v28, %v961_v17  ;;  %v968_v52 = vmul.f32 %v2247_v33, %v967_v41  ;;  %v969_v56 = vmul.f32 %v2253_v20, %v967_v41  ;;  %1480 = vtanh.f32 %v945_v12 }
  0xdb   :  { %v972_v44 = vstv %s2513_s14  ;;  %v982_v23 = vstv %s2507_s12  ;;  %v985_v37 = vstv %s2511_s13  ;;  %1482 = vtanh.f32 %v946_v25  ;;  %s2639_s12 = sld [smem:[#allocation2 + $0x7b]]  ;;  %s2644_s13 = sld [smem:[#allocation4 + $0x1e]] }
  0xdc   :  { %v970_v60 = vadd.f32 %v968_v52, %v965_v59  ;;  %v971_v42 = vadd.f32 %v969_v56, %v966_v40  ;;  %v983_v8 = vmul.f32 %v2281_v2, %v982_v23  ;;  %v1477_v36 = vpop.eup %1476  ;;  %v949_v4 = vstv %s2520_s15  ;;  %s2647_s14 = sld [smem:[#allocation2 + $0x7c]]  ;;  %s2649_s15 = sld [smem:[#allocation2 + $0x7d]] }
  0xdd   :  { %v984_v46 = vmul.f32 %v2287_v43, %v982_v23  ;;  %v986_v15 = vmul.f32 %v2209_v1, %v985_v37  ;;  %v987_v9 = vmul.f32 %v2215_v54, %v985_v37  ;;  %v896_v47 = vadd.f32 %v894_v35, %v868_v22 }
  0xde   :  { %v973_v48 = vadd.f32 %v972_v44, %v970_v60  ;;  %v974_v49 = vadd.f32 %v972_v44, %v971_v42  ;;  %v990_v38 = vstv %s2526_s16  ;;  %v897_v16 = vadd.f32 %v895_v24, %v869_v39  ;;  %s2657_s16 = sld [smem:[#allocation2 + $0x7e]] }
  0xdf   :  { %v988_v50 = vadd.f32 %v986_v15, %v983_v8  ;;  %v989_v45 = vadd.f32 %v987_v9, %v984_v46  ;;  %v991_v57 = vmul.f32 %v2229_v27, %v990_v38  ;;  %v922_v14 = vmul.f32 %v1477_v36, %v921_v51 }
  0xe0   :  { %1484 = vtanh.f32 %v973_v48  ;;  %v992_v61 = vmul.f32 %v2235_v26, %v990_v38  ;;  %v995_v0 = vstv %s2531_s18  ;;  %v1479_v5 = vpop.eup %1478  ;;  %v1000_v34 = vstv %s2534_s19  ;;  %s2659_s18 = sld [smem:[#allocation2 + $0x7f]] }
  0xe1   :  { %v993_v32 = vadd.f32 %v991_v57, %v988_v50  ;;  %v996_v62 = vmul.f32 %v2247_v33, %v995_v0  ;;  %v997_v3 = vmul.f32 %v2253_v20, %v995_v0  ;;  %1486 = vtanh.f32 %v974_v49 }
  0xe2   :  { %v994_v53 = vadd.f32 %v992_v61, %v989_v45  ;;  %v1010_v55 = vstv %s2537_s17  ;;  %v1013_v63 = vstv %s2539_s20  ;;  %v923_v30 = vmul.f32 %v1479_v5, %v921_v51 }
  0xe3   :  { %v998_v6 = vadd.f32 %v996_v62, %v993_v32  ;;  %v1011_v10 = vmul.f32 %v2281_v2, %v1010_v55  ;;  %v1012_v7 = vmul.f32 %v2287_v43, %v1010_v55  ;;  %v1014_v29 = vmul.f32 %v2209_v1, %v1013_v63 }
  0xe4   :  { %v1015_v31 = vmul.f32 %v2215_v54, %v1013_v63  ;;  %v1018_v18 = vstv %s2546_s21  ;;  %v1023_v11 = vstv %s2548_s22  ;;  %v1481_v13 = vpop.eup %1480  ;;  %v999_v58 = vadd.f32 %v997_v3, %v994_v53 }
  0xe5   :  { %v1001_v19 = vadd.f32 %v1000_v34, %v998_v6  ;;  %v1016_v17 = vadd.f32 %v1014_v29, %v1011_v10  ;;  %v1019_v21 = vmul.f32 %v2229_v27, %v1018_v18  ;;  %v1483_v22 = vpop.eup %1482  ;;  %v1020_v25 = vmul.f32 %v2235_v26, %v1018_v18 }
  0xe6   :  { %v1017_v12 = vadd.f32 %v1015_v31, %v1012_v7  ;;  %v924_v28 = vadd.f32 %v922_v14, %v896_v47  ;;  %v977_v39 = vstv %s2556_s23  ;;  %v1024_v51 = vmul.f32 %v2247_v33, %v1023_v11 }
  0xe7   :  { %v1021_v35 = vadd.f32 %v1019_v21, %v1016_v17  ;;  %v925_v59 = vadd.f32 %v923_v30, %v897_v16  ;;  %v950_v41 = vmul.f32 %v1481_v13, %v949_v4  ;;  %v1025_v40 = vmul.f32 %v2253_v20, %v1023_v11 }
  0xe8   :  { %v1022_v24 = vadd.f32 %v1020_v25, %v1017_v12  ;;  %v951_v52 = vmul.f32 %v1483_v22, %v949_v4  ;;  %v1002_v56 = vadd.f32 %v1000_v34, %v999_v58  ;;  %1488 = vtanh.f32 %v1001_v19 }
  0xe9   :  { %v1038_v44 = vstv %s2563_s1  ;;  %v1026_v37 = vadd.f32 %v1024_v51, %v1021_v35  ;;  %v1041_v8 = vstv %s2568_s0  ;;  %v1028_v4 = vstv %s2574_s25 }
  0xea   :  { %v1485_v23 = vpop.eup %1484  ;;  %v1039_v60 = vmul.f32 %v2281_v2, %v1038_v44  ;;  %v1040_v42 = vmul.f32 %v2287_v43, %v1038_v44  ;;  %v1027_v36 = vadd.f32 %v1025_v40, %v1022_v24  ;;  %v1042_v46 = vmul.f32 %v2209_v1, %v1041_v8 }
  0xeb   :  { %v1043_v15 = vmul.f32 %v2215_v54, %v1041_v8  ;;  %v1487_v9 = vpop.eup %1486  ;;  %v952_v47 = vadd.f32 %v950_v41, %v924_v28  ;;  %v1005_v48 = vstv %s2581_s27  ;;  %v1046_v49 = vstv %s2572_s24  ;;  %s2681_s24 = sld [smem:[#allocation4 + $0x1f]] }
  0xec   :  { %v1051_v38 = vstv %s2579_s26  ;;  %v953_v16 = vadd.f32 %v951_v52, %v925_v59  ;;  %1490 = vtanh.f32 %v1002_v56  ;;  %v1044_v50 = vadd.f32 %v1042_v46, %v1039_v60  ;;  %v1527_v60 = vld [vmem:[%s2731_s3 + $0x18] sm:$0xff] }
  0xed   :  { %v1045_v45 = vadd.f32 %v1043_v15, %v1040_v42  ;;  %v978_v57 = vmul.f32 %v1485_v23, %v977_v39  ;;  %v1029_v14 = vadd.f32 %v1028_v4, %v1026_v37  ;;  %v1047_v61 = vmul.f32 %v2229_v27, %v1046_v49  ;;  %v1528_v15 = vld [vmem:[%s2731_s3 + $0x20] sm:$0xff] }
  0xee   :  { %v1048_v0 = vmul.f32 %v2235_v26, %v1046_v49  ;;  %v979_v5 = vmul.f32 %v1487_v9, %v977_v39  ;;  %v1030_v32 = vadd.f32 %v1028_v4, %v1027_v36  ;;  %v1052_v62 = vmul.f32 %v2247_v33, %v1051_v38  ;;  %v1529_v49 = vld [vmem:[%s2731_s3 + $0x28] sm:$0xff] }
  0xef   :  { %v1053_v3 = vmul.f32 %v2253_v20, %v1051_v38  ;;  %v1049_v34 = vadd.f32 %v1047_v61, %v1044_v50  ;;  %v1066_v55 = vstv %s2592_s28  ;;  %v1069_v63 = vstv %s2594_s29  ;;  %v1530_v50 = vld [vmem:[%s2731_s3 + $0x30] sm:$0xff]  ;;  %s2692_s29 = sld [smem:[#allocation6 + $0x1d]] }
  0xf0   :  { %v1050_v53 = vadd.f32 %v1048_v0, %v1045_v45  ;;  %v1067_v6 = vmul.f32 %v2281_v2, %v1066_v55  ;;  %v1068_v10 = vmul.f32 %v2287_v43, %v1066_v55  ;;  %v1070_v7 = vmul.f32 %v2209_v1, %v1069_v63 }
  0xf1   :  { %v1071_v29 = vmul.f32 %v2215_v54, %v1069_v63  ;;  %v1054_v30 = vadd.f32 %v1052_v62, %v1049_v34  ;;  %v1056_v18 = vstv %s2600_s2  ;;  %v1074_v11 = vstv %s2598_s30  ;;  %v1533_v63 = vld [vmem:[%s2731_s3 + $0x8] sm:$0xff] }
  0xf2   :  { %v1055_v31 = vadd.f32 %v1053_v3, %v1050_v53  ;;  %v1489_v13 = vpop.eup %1488  ;;  %v1033_v58 = vstv %s2605_s5  ;;  %v1072_v19 = vadd.f32 %v1070_v7, %v1067_v6  ;;  %v1075_v21 = vmul.f32 %v2229_v27, %v1074_v11  ;;  %v1532_v53 = vld [vmem:[%s2731_s3] sm:$0xff]  ;;  %s1374_s5 = sld [smem:[#allocation6 + $0x1f]] }
  0xf3   :  { %v1073_v17 = vadd.f32 %v1071_v29, %v1068_v10  ;;  %v980_v22 = vadd.f32 %v978_v57, %v952_v47  ;;  %v2641_v1 = vadd.f32 %v979_v5, %v953_v16  ;;  %1492 = vtanh.f32 %v1029_v14  ;;  %v1531_v57 = vld [vmem:[%s2731_s3 + $0x38] sm:$0xff] }
  0xf4   :  { %v1076_v54 = vmul.f32 %v2235_v26, %v1074_v11  ;;  %1494 = vtanh.f32 %v1030_v32  ;;  %v1057_v12 = vadd.f32 %v1056_v18, %v1054_v30  ;;  %v1077_v25 = vadd.f32 %v1075_v21, %v1072_v19 }
  0xf5   :  { %v1079_v28 = vstv %s2613_s6  ;;  %v1058_v27 = vadd.f32 %v1056_v18, %v1055_v31  ;;  %v1061_v26 = vstv %s2623_s10  ;;  %v1084_v41 = vstv %s2621_s9 }
  0xf6   :  { %v1078_v39 = vadd.f32 %v1076_v54, %v1073_v17  ;;  %v1080_v35 = vmul.f32 %v2247_v33, %v1079_v28  ;;  %v1081_v51 = vmul.f32 %v2253_v20, %v1079_v28  ;;  %v1491_v59 = vpop.eup %1490  ;;  %v1094_v24 = vstv %s2615_s7  ;;  %v1526_v20 = vld [vmem:[%s2731_s3 + $0x10] sm:$0xff]  ;;  %s2705_s3 = sld [smem:[#allocation6 + $0x1e]] }
  0xf7   :  { %v1097_v40 = vstv %s2617_s8  ;;  %v1006_v52 = vmul.f32 %v1489_v13, %v1005_v48  ;;  %v1095_v23 = vmul.f32 %v2281_v2, %v1094_v24  ;;  %1496 = vtanh.f32 %v1057_v12 }
  0xf8   :  { %v1082_v56 = vadd.f32 %v1080_v35, %v1077_v25  ;;  %v1083_v44 = vadd.f32 %v1081_v51, %v1078_v39  ;;  %v1096_v33 = vmul.f32 %v2287_v43, %v1094_v24  ;;  %v1098_v37 = vmul.f32 %v1526_v20, %v1097_v40 }
  0xf9   :  { %v1099_v42 = vmul.f32 %v1527_v60, %v1097_v40  ;;  %1498 = vtanh.f32 %v1058_v27  ;;  %v1102_v4 = vstv %s2633_s11  ;;  %v1007_v2 = vmul.f32 %v1491_v59, %v1005_v48 }
  0xfa   :  { %v1085_v8 = vadd.f32 %v1084_v41, %v1082_v56  ;;  %v1086_v36 = vadd.f32 %v1084_v41, %v1083_v44  ;;  %v1100_v46 = vadd.f32 %v1098_v37, %v1095_v23  ;;  %v1103_v9 = vmul.f32 %v1528_v15, %v1102_v4 }
  0xfb   :  { %v1101_v43 = vadd.f32 %v1099_v42, %v1096_v33  ;;  %v1008_v47 = vadd.f32 %v1006_v52, %v980_v22  ;;  %v1104_v38 = vmul.f32 %v1529_v49, %v1102_v4  ;;  %v1107_v16 = vstv %s2639_s12 }
  0xfc   :  { %1500 = vtanh.f32 %v1085_v8  ;;  %v1105_v48 = vadd.f32 %v1103_v9, %v1100_v46  ;;  %v1108_v45 = vmul.f32 %v1530_v50, %v1107_v16  ;;  %v1109_v14 = vmul.f32 %v1531_v57, %v1107_v16 }
  0xfd   :  { %v1112_v61 = vstv %s2644_s13  ;;  %v1493_v0 = vpop.eup %1492  ;;  %1502 = vtanh.f32 %v1086_v36  ;;  %v1106_v5 = vadd.f32 %v1104_v38, %v1101_v43  ;;  %v1122_v32 = vstv %s2647_s14 }
  0xfe   :  { %v1125_v62 = vstv %s2649_s15  ;;  %v1495_v3 = vpop.eup %1494  ;;  %v1110_v34 = vadd.f32 %v1108_v45, %v1105_v48  ;;  %v1123_v55 = vmul.f32 %v1532_v53, %v1122_v32  ;;  %v1124_v6 = vmul.f32 %v1533_v63, %v1122_v32 }
  0xff   :  { %v1126_v10 = vmul.f32 %v1526_v20, %v1125_v62  ;;  %v1111_v7 = vadd.f32 %v1109_v14, %v1106_v5  ;;  %v1127_v29 = vmul.f32 %v1527_v60, %v1125_v62  ;;  %v1130_v30 = vstv %s2657_s16 }
 0x100   :  { %v1135_v31 = vstv %s2659_s18  ;;  %v1009_v18 = vadd.f32 %v1007_v2, %v2641_v1  ;;  %v1113_v11 = vadd.f32 %v1112_v61, %v1110_v34  ;;  %v1131_v19 = vmul.f32 %v1528_v15, %v1130_v30 }
 0x101   :  { %v1128_v13 = vadd.f32 %v1126_v10, %v1123_v55  ;;  %v1034_v17 = vmul.f32 %v1493_v0, %v1033_v58  ;;  %v1114_v21 = vadd.f32 %v1112_v61, %v1111_v7  ;;  %v1129_v22 = vadd.f32 %v1127_v29, %v1124_v6  ;;  %v1497_v12 = vpop.eup %1496 }
 0x102   :  { %v1132_v54 = vmul.f32 %v1529_v49, %v1130_v30  ;;  %v1035_v25 = vmul.f32 %v1495_v3, %v1033_v58  ;;  %1504 = vtanh.f32 %v1113_v11  ;;  %v1136_v1 = vmul.f32 %v1530_v50, %v1135_v31 }
 0x103   :  { %v1133_v28 = vadd.f32 %v1131_v19, %v1128_v13  ;;  %v1499_v27 = vpop.eup %1498  ;;  %1506 = vtanh.f32 %v1114_v21  ;;  %v1137_v35 = vmul.f32 %v1531_v57, %v1135_v31  ;;  %v1140_v59 = vstv %s2681_s24 }
 0x104   :  { %v1134_v39 = vadd.f32 %v1132_v54, %v1129_v22  ;;  %v1036_v24 = vadd.f32 %v1034_v17, %v1008_v47  ;;  %v1062_v40 = vmul.f32 %v1497_v12, %v1061_v26  ;;  %v1037_v56 = vadd.f32 %v1035_v25, %v1009_v18 }
 0x105   :  { %v1138_v51 = vadd.f32 %v1136_v1, %v1133_v28  ;;  %v1063_v44 = vmul.f32 %v1499_v27, %v1061_v26  ;;  %v1089_v58 = vstv %s2692_s29  ;;  %v1117_v36 = vstv %s2705_s3 }
 0x106   :  { %v1501_v41 = vpop.eup %1500  ;;  %v1139_v52 = vadd.f32 %v1137_v35, %v1134_v39  ;;  %v1064_v37 = vadd.f32 %v1062_v40, %v1036_v24  ;;  %v1145_v47 = vstv %s1374_s5 }
 0x107   :  { %v1141_v23 = vadd.f32 %v1140_v59, %v1138_v51  ;;  %v1503_v33 = vpop.eup %1502  ;;  %v1090_v60 = vmul.f32 %v1501_v41, %v1089_v58  ;;  %v1065_v42 = vadd.f32 %v1063_v44, %v1037_v56 }
 0x108   :  { %v1142_v20 = vadd.f32 %v1140_v59, %v1139_v52  ;;  %v1091_v8 = vmul.f32 %v1503_v33, %v1089_v58 }
 0x109   :  { %1508 = vtanh.f32 %v1141_v23  ;;  %v1092_v46 = vadd.f32 %v1090_v60, %v1064_v37 }
 0x10a   :  { %1510 = vtanh.f32 %v1142_v20  ;;  %v1093_v15 = vadd.f32 %v1091_v8, %v1065_v42 }
 0x10c   :  { %v1505_v4 = vpop.eup %1504 }
 0x10d   :  { %v1507_v2 = vpop.eup %1506  ;;  %v1118_v43 = vmul.f32 %v1505_v4, %v1117_v36 }
 0x10e   :  { %v1119_v9 = vmul.f32 %v1507_v2, %v1117_v36 }
 0x10f   :  { %v1120_v26 = vadd.f32 %v1118_v43, %v1092_v46 }
 0x110   :  { %v1121_v38 = vadd.f32 %v1119_v9, %v1093_v15 }
 0x113   :  { %v1509_v49 = vpop.eup %1508 }
 0x114   :  { %v1511_v16 = vpop.eup %1510  ;;  %v1146_v48 = vmul.f32 %v1509_v49, %v1145_v47 }
 0x115   :  { %v1147_v50 = vmul.f32 %v1511_v16, %v1145_v47 }
 0x116   :  { %v1148_v45 = vadd.f32 %v1146_v48, %v1120_v26 }
 0x117   :  { %v1149_v57 = vadd.f32 %v1147_v50, %v1121_v38 }
 0x118   :  { %v1151_v14 = vsel %vm1150_vm0, %v1148_v45, -inf }
 0x119   :  { %v1152_v61 = vsel %vm1150_vm0, %v1149_v57, -inf }
 0x11a   :  { %v1153_v0 = vmax.f32 %v1151_v14, %v1152_v61 }
 0x11c   :  { %v1154_v5 = vrot.slane %v1153_v0, 4 }
 0x11e   :  { %v1155_v32 = vmax.f32 %v1153_v0, %v1154_v5 }
 0x120   :  { %v1156_v62 = vrot.slane %v1155_v32, 2 }
 0x122   :  { %v1157_v3 = vmax.f32 %v1155_v32, %v1156_v62 }
 0x124   :  { %v1158_v34 = vrot.slane %v1157_v3, 1 }
 0x126   :  { %v1159_v53 = vmax.f32 %v1157_v3, %v1158_v34 }
 0x128   :  { %v1160_v55 = vsub.f32 %v1148_v45, %v1159_v53  ;;  %v1161_v63 = vsub.f32 %v1149_v57, %v1159_v53 }
 0x12a   :  { %v1162_v6 = vmul.f32 1.442695, %v1160_v55  ;;  %v1164_v10 = vmul.f32 1.442695, %v1161_v63 }
 0x12c   :  { %1512 = vpow2.f32 %v1162_v6 }
 0x12d   :  { %1514 = vpow2.f32 %v1164_v10 }
 0x136   :  { %v1513_v7 = vpop.eup %1512 }
 0x137   :  { %v1515_v29 = vpop.eup %1514  ;;  %v1166_v30 = vsel %vm1150_vm0, %v1513_v7, 0.0 }
 0x138   :  { %v1167_v31 = vsel %vm1150_vm0, %v1515_v29, 0.0 }
 0x139   :  { %v1168_v18 = vadd.f32 %v1167_v31, %v1166_v30 }
 0x13b   :  { %v1169_v11 = vrot.slane %v1168_v18, 4 }
 0x13d   :  { %v1170_v13 = vadd.f32 %v1169_v11, %v1168_v18 }
 0x13f   :  { %v1171_v19 = vrot.slane %v1170_v13, 2 }
 0x141   :  { %v1172_v17 = vadd.f32 %v1171_v19, %v1170_v13 }
 0x143   :  { %v1173_v21 = vrot.slane %v1172_v17, 1 }
 0x145   :  { %v1174_v22 = vadd.f32 %v1173_v21, %v1172_v17 }
 0x147   :  { %1516 = vrcp.f32 %v1174_v22 }
 0x151   :  { %v1517_v54 = vpop.eup %1516 }
 0x152   :  { %v1176_v12 = vmul.f32 %v1517_v54, %v1513_v7  ;;  %v1177_v25 = vmul.f32 %v1517_v54, %v1515_v29 }
 0x154   :  { %1178 = vst.msk [vmem:[%s2732_s4] sm:$0xff] %vm1150_vm0, %v1176_v12  ;;  %1179 = vst.msk [vmem:[%s2732_s4 + $0x8] sm:$0xff] %vm1150_vm0, %v1177_v25 }
 0x155   :  { %1184 = vsyncpa [#allocation3], 1 }
 0x156   :  { %1185 = vsyncpa [#allocation5], 1 }

</bundles_post_ra>
